<compile_context>
chip_gen: v5e
topology: v5e:2x2
jax: 0.10.0
libtpu: 0.0.40
codegen_flags: <defaults>
</compile_context>

<pallas_src>
import jax
import jax.numpy as jnp
from jax import lax
from jax.experimental import pallas as pl
from jax.experimental.pallas import tpu as pltpu


def lstm_kernel(x_ref, w_ihb_ref, w_hh_ref, out_ref):
    """Whole-sequence LSTM recurrence in a single invocation.

    x_ref    : (S*Bp, IP) f32  time-major flattened inputs; lane I holds the
                               constant 1.0 bias lane, remaining pads are zero.
    w_ihb_ref: (IP, 4H)   f32  [W_ih^T ; b_ih+b_hh ; 0-pad], PyTorch gate order.
    w_hh_ref : (4H, 4H)   f32  rows [0,H) = W_hh^T, rows [H,4H) = 0.
    out_ref  : (S, Bp, 4H) f32 out_ref[t, :, :H] holds h_t (lanes [H:) garbage).
    """
    S, Bp, H4 = out_ref.shape
    H = H4 // 4

    # Hoisted input projection + bias for ALL timesteps: one MXU pass.
    gates_x = jnp.dot(x_ref[...], w_ihb_ref[...],
                      preferred_element_type=jnp.float32)          # (S*Bp, 4H)
    w_hh = w_hh_ref[...]                                           # (4H, 4H)

    h_wide = jnp.zeros((Bp, H4), jnp.float32)   # lanes [0,H) = h, rest bounded junk
    c = jnp.zeros((Bp, H4), jnp.float32)        # wide cell state; lanes [0,H) valid

    # S is small and static: fully unroll so every slice / store index is static.
    for t in range(S):
        # Recurrent matmul is full (Bp,4H)x(4H,4H); zero rows [H:) of w_hh kill
        # the garbage lanes of h_wide, so this equals h @ W_hh^T on lanes [0,4H).
        gates = gates_x[t * Bp:(t + 1) * Bp, :] + jnp.dot(
            h_wide, w_hh, preferred_element_type=jnp.float32)      # (Bp, 4H)

        sig = jax.nn.sigmoid(gates)             # full-width EUP
        th = jnp.tanh(gates)                    # full-width EUP
        # Align gate blocks (PyTorch order i,f,g,o) onto lanes [0,H) via XLU
        # rolls (out[j] = in[j - shift mod 4H]).
        i_w = sig                               # i already at lanes [0,H)
        f_w = pltpu.roll(sig, shift=3 * H, axis=1)   # f: [H,2H)  -> [0,H)
        g_w = pltpu.roll(th, shift=2 * H, axis=1)    # g: [2H,3H) -> [0,H)
        o_w = pltpu.roll(sig, shift=H, axis=1)       # o: [3H,4H) -> [0,H)

        c = f_w * c + i_w * g_w                 # full-lane VPU; lanes [0,H) valid
        h_wide = o_w * jnp.tanh(c)              # bounded everywhere

        out_ref[t] = h_wide.astype(out_ref.dtype)    # unmasked (Bp,128) store


def _round_up(v, m):
    return (v + m - 1) // m * m


@jax.jit
def lstm_forward(x, w_ih, w_hh, b_ih, b_hh):
    """x: (B, S, I) f32, batch_first (like PyTorch).  Returns (B, S, H)."""
    B, S, I = x.shape
    H = w_hh.shape[1]
    H4 = 4 * H

    Bp = _round_up(max(B, 8), 8)    # f32 sublane multiple -> unmasked sublane tiles
    IP = _round_up(I + 1, 8)        # room for the constant bias lane + pad

    # --- tiny one-time glue in plain JAX --------------------------------------
    # Time-major, batch/feature-padded input; lane I carries the bias lane (1.0).
    x_tm = jnp.transpose(x, (1, 0, 2)).astype(jnp.float32)           # (S, B, I)
    x_p = jnp.zeros((S, Bp, IP), jnp.float32)
    x_p = x_p.at[:, :B, :I].set(x_tm)
    x_p = x_p.at[:, :, I].set(1.0)                                   # bias lane
    x_flat = x_p.reshape(S * Bp, IP)

    # Fused input weight: rows [0,I)=W_ih^T, row I=b_ih+b_hh, rest 0.
    w_ihb = jnp.zeros((IP, H4), jnp.float32)
    w_ihb = w_ihb.at[:I, :].set(w_ih.T.astype(jnp.float32))
    w_ihb = w_ihb.at[I, :].set((b_ih + b_hh).astype(jnp.float32))

    # Lane-wide recurrent weight: rows [0,H)=W_hh^T, rows [H,4H)=0.
    w_hh_wide = jnp.zeros((H4, H4), jnp.float32)
    w_hh_wide = w_hh_wide.at[:H, :].set(w_hh.T.astype(jnp.float32))

    out = pl.pallas_call(
        lstm_kernel,
        out_shape=jax.ShapeDtypeStruct((S, Bp, H4), jnp.float32),
        grid=(1,),                                           # single invocation
        in_specs=[
            pl.BlockSpec((S * Bp, IP), lambda i: (0, 0)),    # x (whole array)
            pl.BlockSpec((IP, H4), lambda i: (0, 0)),        # fused W_ih + bias
            pl.BlockSpec((H4, H4), lambda i: (0, 0)),        # wide W_hh
        ],
        out_specs=pl.BlockSpec((S, Bp, H4), lambda i: (0, 0, 0)),
        compiler_params=pltpu.CompilerParams(
            dimension_semantics=("arbitrary",),
        ),
    )(x_flat, w_ihb, w_hh_wide)

    # (S, Bp, 4H) -> (B, S, H), batch_first like PyTorch.
    return jnp.transpose(out[:, :B, :H], (1, 0, 2))


def lstm_reference(x, w_ih, w_hh, b_ih, b_hh):
    """Pure-JAX reference (same math as torch.nn.LSTM, gate order i,f,g,o)."""
    B, S, I = x.shape
    H = w_hh.shape[1]
    b = b_ih + b_hh

    def step(carry, x_t):
        h, c = carry
        gates = x_t @ w_ih.T + h @ w_hh.T + b
        i_g = jax.nn.sigmoid(gates[:, 0 * H:1 * H])
        f_g = jax.nn.sigmoid(gates[:, 1 * H:2 * H])
        g_g = jnp.tanh(gates[:, 2 * H:3 * H])
        o_g = jax.nn.sigmoid(gates[:, 3 * H:4 * H])
        c_new = f_g * c + i_g * g_g
        h_new = o_g * jnp.tanh(c_new)
        return (h_new, c_new), h_new

    h0 = jnp.zeros((B, H), jnp.float32)
    c0 = jnp.zeros((B, H), jnp.float32)
    _, hs = lax.scan(step, (h0, c0), jnp.transpose(x, (1, 0, 2)))
    return jnp.transpose(hs, (1, 0, 2))


if __name__ == "__main__":
    # Shapes consistent with the module: batch_size=10 (hard-coded), seq=8,
    # n_input_features=4, n_hidden_features=32, n_layers=1, unidirectional.
    B, S, I, H = 10, 8, 4, 32

    key = jax.random.PRNGKey(0)
    k_x, k_wih, k_whh, k_bih, k_bhh = jax.random.split(key, 5)

    bound = 1.0 / jnp.sqrt(jnp.float32(H))     # PyTorch-style U(-1/sqrt(H), 1/sqrt(H))
    x = jax.random.normal(k_x, (B, S, I), dtype=jnp.float32)
    w_ih = jax.random.uniform(k_wih, (4 * H, I), jnp.float32, -bound, bound)
    w_hh = jax.random.uniform(k_whh, (4 * H, H), jnp.float32, -bound, bound)
    b_ih = jax.random.uniform(k_bih, (4 * H,), jnp.float32, -bound, bound)
    b_hh = jax.random.uniform(k_bhh, (4 * H,), jnp.float32, -bound, bound)

    out = jax.block_until_ready(lstm_forward(x, w_ih, w_hh, b_ih, b_hh))
    ref = lstm_reference(x, w_ih, w_hh, b_ih, b_hh)

    assert out.shape == (B, S, H)
    max_err = float(jnp.max(jnp.abs(out - ref)))
    assert jnp.allclose(out, ref, atol=2e-5, rtol=2e-5), max_err

    print("KERNEL_OK")
</pallas_src>

<mosaic_0001>
module attributes {stable_mosaic.version = 11 : i64} {
  func.func @lstm_kernel(%arg0: i32, %arg1: memref<128x8xf32, #tpu.memory_space<vmem>>, %arg2: memref<8x128xf32, #tpu.memory_space<vmem>>, %arg3: memref<128x128xf32, #tpu.memory_space<vmem>>, %arg4: memref<8x16x128xf32, #tpu.memory_space<vmem>>) attributes {dimension_semantics = [#tpu.dimension_semantics<arbitrary>], iteration_bounds = array<i64: 1>, scalar_prefetch = 0 : i64, scratch_operands = 0 : i64, tpu.core_type = #tpu.core_type<tc>, window_params = [{pipeline_mode = #tpu.pipeline_mode<synchronous>, transform_indices = @transform_0, window_bounds = array<i64: 128, 8>}, {pipeline_mode = #tpu.pipeline_mode<synchronous>, transform_indices = @transform_1, window_bounds = array<i64: 8, 128>}, {pipeline_mode = #tpu.pipeline_mode<synchronous>, transform_indices = @transform_2, window_bounds = array<i64: 128, 128>}, {pipeline_mode = #tpu.pipeline_mode<synchronous>, transform_indices = @transform_3, window_bounds = array<i64: 8, 16, 128>}]} {
    %c0 = arith.constant 0 : index
    %c0_0 = arith.constant 0 : index
    %0 = vector.load %arg1[%c0, %c0_0] : memref<128x8xf32, #tpu.memory_space<vmem>>, vector<128x8xf32>
    %c0_1 = arith.constant 0 : index
    %c0_2 = arith.constant 0 : index
    %1 = vector.load %arg2[%c0_1, %c0_2] : memref<8x128xf32, #tpu.memory_space<vmem>>, vector<8x128xf32>
    %cst = arith.constant dense<0.000000e+00> : vector<128x128xf32>
    %2 = tpu.matmul %0, %1, %cst {dimension_numbers = #tpu.dot_dimension_numbers<[1], [0], [0], [1], [0, 0, 1, 1], [], []>} : vector<128x8xf32>, vector<8x128xf32>, vector<128x128xf32> -> vector<128x128xf32>
    %c0_3 = arith.constant 0 : index
    %c0_4 = arith.constant 0 : index
    %3 = vector.load %arg3[%c0_3, %c0_4] : memref<128x128xf32, #tpu.memory_space<vmem>>, vector<128x128xf32>
    %cst_5 = arith.constant 0.000000e+00 : f32
    %4 = vector.broadcast %cst_5 : f32 to vector<16x128xf32>
    %cst_6 = arith.constant 0.000000e+00 : f32
    %5 = vector.broadcast %cst_6 : f32 to vector<16x128xf32>
    %6 = vector.extract_strided_slice %2 {offsets = [0, 0], sizes = [16, 128], strides = [1, 1]} : vector<128x128xf32> to vector<16x128xf32>
    %cst_7 = arith.constant dense<0.000000e+00> : vector<16x128xf32>
    %7 = tpu.matmul %4, %3, %cst_7 {dimension_numbers = #tpu.dot_dimension_numbers<[1], [0], [0], [1], [0, 0, 1, 1], [], []>} : vector<16x128xf32>, vector<128x128xf32>, vector<16x128xf32> -> vector<16x128xf32>
    %8 = arith.addf %6, %7 : vector<16x128xf32>
    %9 = arith.negf %8 : vector<16x128xf32>
    %10 = math.exp %9 : vector<16x128xf32>
    %cst_8 = arith.constant 1.000000e+00 : f32
    %11 = vector.broadcast %cst_8 : f32 to vector<16x128xf32>
    %12 = arith.addf %11, %10 : vector<16x128xf32>
    %13 = arith.divf %11, %12 : vector<16x128xf32>
    %14 = math.tanh %8 : vector<16x128xf32>
    %c96_i32 = arith.constant 96 : i32
    %15 = tpu.dynamic_rotate %13 by %c96_i32 dim 1 : vector<16x128xf32>, i32 -> vector<16x128xf32>
    %c64_i32 = arith.constant 64 : i32
    %16 = tpu.dynamic_rotate %14 by %c64_i32 dim 1 : vector<16x128xf32>, i32 -> vector<16x128xf32>
    %c32_i32 = arith.constant 32 : i32
    %17 = tpu.dynamic_rotate %13 by %c32_i32 dim 1 : vector<16x128xf32>, i32 -> vector<16x128xf32>
    %18 = arith.mulf %15, %5 : vector<16x128xf32>
    %19 = arith.mulf %13, %16 : vector<16x128xf32>
    %20 = arith.addf %18, %19 : vector<16x128xf32>
    %21 = math.tanh %20 : vector<16x128xf32>
    %22 = arith.mulf %17, %21 : vector<16x128xf32>
    %c0_9 = arith.constant 0 : index
    %c0_10 = arith.constant 0 : index
    %c0_11 = arith.constant 0 : index
    %23 = vector.load %arg4[%c0_9, %c0_10, %c0_11] : memref<8x16x128xf32, #tpu.memory_space<vmem>>, vector<1x16x128xf32>
    %24 = vector.shape_cast %23 : vector<1x16x128xf32> to vector<16x128xf32>
    %25 = vector.shape_cast %22 : vector<16x128xf32> to vector<1x16x128xf32>
    tpu.vector_store %arg4[%c0_9, %c0_10, %c0_11], %25 {strides = array<i32>} : memref<8x16x128xf32, #tpu.memory_space<vmem>>, vector<1x16x128xf32>,
    %26 = vector.extract_strided_slice %2 {offsets = [16, 0], sizes = [16, 128], strides = [1, 1]} : vector<128x128xf32> to vector<16x128xf32>
    %cst_12 = arith.constant dense<0.000000e+00> : vector<16x128xf32>
    %27 = tpu.matmul %22, %3, %cst_12 {dimension_numbers = #tpu.dot_dimension_numbers<[1], [0], [0], [1], [0, 0, 1, 1], [], []>} : vector<16x128xf32>, vector<128x128xf32>, vector<16x128xf32> -> vector<16x128xf32>
    %28 = arith.addf %26, %27 : vector<16x128xf32>
    %29 = arith.negf %28 : vector<16x128xf32>
    %30 = math.exp %29 : vector<16x128xf32>
    %cst_13 = arith.constant 1.000000e+00 : f32
    %31 = vector.broadcast %cst_13 : f32 to vector<16x128xf32>
    %32 = arith.addf %31, %30 : vector<16x128xf32>
    %33 = arith.divf %31, %32 : vector<16x128xf32>
    %34 = math.tanh %28 : vector<16x128xf32>
    %c96_i32_14 = arith.constant 96 : i32
    %35 = tpu.dynamic_rotate %33 by %c96_i32_14 dim 1 : vector<16x128xf32>, i32 -> vector<16x128xf32>
    %c64_i32_15 = arith.constant 64 : i32
    %36 = tpu.dynamic_rotate %34 by %c64_i32_15 dim 1 : vector<16x128xf32>, i32 -> vector<16x128xf32>
    %c32_i32_16 = arith.constant 32 : i32
    %37 = tpu.dynamic_rotate %33 by %c32_i32_16 dim 1 : vector<16x128xf32>, i32 -> vector<16x128xf32>
    %38 = arith.mulf %35, %20 : vector<16x128xf32>
    %39 = arith.mulf %33, %36 : vector<16x128xf32>
    %40 = arith.addf %38, %39 : vector<16x128xf32>
    %41 = math.tanh %40 : vector<16x128xf32>
    %42 = arith.mulf %37, %41 : vector<16x128xf32>
    %c1 = arith.constant 1 : index
    %c0_17 = arith.constant 0 : index
    %c0_18 = arith.constant 0 : index
    %43 = vector.load %arg4[%c1, %c0_17, %c0_18] : memref<8x16x128xf32, #tpu.memory_space<vmem>>, vector<1x16x128xf32>
    %44 = vector.shape_cast %43 : vector<1x16x128xf32> to vector<16x128xf32>
    %45 = vector.shape_cast %42 : vector<16x128xf32> to vector<1x16x128xf32>
    tpu.vector_store %arg4[%c1, %c0_17, %c0_18], %45 {strides = array<i32>} : memref<8x16x128xf32, #tpu.memory_space<vmem>>, vector<1x16x128xf32>,
    %46 = vector.extract_strided_slice %2 {offsets = [32, 0], sizes = [16, 128], strides = [1, 1]} : vector<128x128xf32> to vector<16x128xf32>
    %cst_19 = arith.constant dense<0.000000e+00> : vector<16x128xf32>
    %47 = tpu.matmul %42, %3, %cst_19 {dimension_numbers = #tpu.dot_dimension_numbers<[1], [0], [0], [1], [0, 0, 1, 1], [], []>} : vector<16x128xf32>, vector<128x128xf32>, vector<16x128xf32> -> vector<16x128xf32>
    %48 = arith.addf %46, %47 : vector<16x128xf32>
    %49 = arith.negf %48 : vector<16x128xf32>
    %50 = math.exp %49 : vector<16x128xf32>
    %cst_20 = arith.constant 1.000000e+00 : f32
    %51 = vector.broadcast %cst_20 : f32 to vector<16x128xf32>
    %52 = arith.addf %51, %50 : vector<16x128xf32>
    %53 = arith.divf %51, %52 : vector<16x128xf32>
    %54 = math.tanh %48 : vector<16x128xf32>
    %c96_i32_21 = arith.constant 96 : i32
    %55 = tpu.dynamic_rotate %53 by %c96_i32_21 dim 1 : vector<16x128xf32>, i32 -> vector<16x128xf32>
    %c64_i32_22 = arith.constant 64 : i32
    %56 = tpu.dynamic_rotate %54 by %c64_i32_22 dim 1 : vector<16x128xf32>, i32 -> vector<16x128xf32>
    %c32_i32_23 = arith.constant 32 : i32
    %57 = tpu.dynamic_rotate %53 by %c32_i32_23 dim 1 : vector<16x128xf32>, i32 -> vector<16x128xf32>
    %58 = arith.mulf %55, %40 : vector<16x128xf32>
    %59 = arith.mulf %53, %56 : vector<16x128xf32>
    %60 = arith.addf %58, %59 : vector<16x128xf32>
    %61 = math.tanh %60 : vector<16x128xf32>
    %62 = arith.mulf %57, %61 : vector<16x128xf32>
    %c2 = arith.constant 2 : index
    %c0_24 = arith.constant 0 : index
    %c0_25 = arith.constant 0 : index
    %63 = vector.load %arg4[%c2, %c0_24, %c0_25] : memref<8x16x128xf32, #tpu.memory_space<vmem>>, vector<1x16x128xf32>
    %64 = vector.shape_cast %63 : vector<1x16x128xf32> to vector<16x128xf32>
    %65 = vector.shape_cast %62 : vector<16x128xf32> to vector<1x16x128xf32>
    tpu.vector_store %arg4[%c2, %c0_24, %c0_25], %65 {strides = array<i32>} : memref<8x16x128xf32, #tpu.memory_space<vmem>>, vector<1x16x128xf32>,
    %66 = vector.extract_strided_slice %2 {offsets = [48, 0], sizes = [16, 128], strides = [1, 1]} : vector<128x128xf32> to vector<16x128xf32>
    %cst_26 = arith.constant dense<0.000000e+00> : vector<16x128xf32>
    %67 = tpu.matmul %62, %3, %cst_26 {dimension_numbers = #tpu.dot_dimension_numbers<[1], [0], [0], [1], [0, 0, 1, 1], [], []>} : vector<16x128xf32>, vector<128x128xf32>, vector<16x128xf32> -> vector<16x128xf32>
    %68 = arith.addf %66, %67 : vector<16x128xf32>
    %69 = arith.negf %68 : vector<16x128xf32>
    %70 = math.exp %69 : vector<16x128xf32>
    %cst_27 = arith.constant 1.000000e+00 : f32
    %71 = vector.broadcast %cst_27 : f32 to vector<16x128xf32>
    %72 = arith.addf %71, %70 : vector<16x128xf32>
    %73 = arith.divf %71, %72 : vector<16x128xf32>
    %74 = math.tanh %68 : vector<16x128xf32>
    %c96_i32_28 = arith.constant 96 : i32
    %75 = tpu.dynamic_rotate %73 by %c96_i32_28 dim 1 : vector<16x128xf32>, i32 -> vector<16x128xf32>
    %c64_i32_29 = arith.constant 64 : i32
    %76 = tpu.dynamic_rotate %74 by %c64_i32_29 dim 1 : vector<16x128xf32>, i32 -> vector<16x128xf32>
    %c32_i32_30 = arith.constant 32 : i32
    %77 = tpu.dynamic_rotate %73 by %c32_i32_30 dim 1 : vector<16x128xf32>, i32 -> vector<16x128xf32>
    %78 = arith.mulf %75, %60 : vector<16x128xf32>
    %79 = arith.mulf %73, %76 : vector<16x128xf32>
    %80 = arith.addf %78, %79 : vector<16x128xf32>
    %81 = math.tanh %80 : vector<16x128xf32>
    %82 = arith.mulf %77, %81 : vector<16x128xf32>
    %c3 = arith.constant 3 : index
    %c0_31 = arith.constant 0 : index
    %c0_32 = arith.constant 0 : index
    %83 = vector.load %arg4[%c3, %c0_31, %c0_32] : memref<8x16x128xf32, #tpu.memory_space<vmem>>, vector<1x16x128xf32>
    %84 = vector.shape_cast %83 : vector<1x16x128xf32> to vector<16x128xf32>
    %85 = vector.shape_cast %82 : vector<16x128xf32> to vector<1x16x128xf32>
    tpu.vector_store %arg4[%c3, %c0_31, %c0_32], %85 {strides = array<i32>} : memref<8x16x128xf32, #tpu.memory_space<vmem>>, vector<1x16x128xf32>,
    %86 = vector.extract_strided_slice %2 {offsets = [64, 0], sizes = [16, 128], strides = [1, 1]} : vector<128x128xf32> to vector<16x128xf32>
    %cst_33 = arith.constant dense<0.000000e+00> : vector<16x128xf32>
    %87 = tpu.matmul %82, %3, %cst_33 {dimension_numbers = #tpu.dot_dimension_numbers<[1], [0], [0], [1], [0, 0, 1, 1], [], []>} : vector<16x128xf32>, vector<128x128xf32>, vector<16x128xf32> -> vector<16x128xf32>
    %88 = arith.addf %86, %87 : vector<16x128xf32>
    %89 = arith.negf %88 : vector<16x128xf32>
    %90 = math.exp %89 : vector<16x128xf32>
    %cst_34 = arith.constant 1.000000e+00 : f32
    %91 = vector.broadcast %cst_34 : f32 to vector<16x128xf32>
    %92 = arith.addf %91, %90 : vector<16x128xf32>
    %93 = arith.divf %91, %92 : vector<16x128xf32>
    %94 = math.tanh %88 : vector<16x128xf32>
    %c96_i32_35 = arith.constant 96 : i32
    %95 = tpu.dynamic_rotate %93 by %c96_i32_35 dim 1 : vector<16x128xf32>, i32 -> vector<16x128xf32>
    %c64_i32_36 = arith.constant 64 : i32
    %96 = tpu.dynamic_rotate %94 by %c64_i32_36 dim 1 : vector<16x128xf32>, i32 -> vector<16x128xf32>
    %c32_i32_37 = arith.constant 32 : i32
    %97 = tpu.dynamic_rotate %93 by %c32_i32_37 dim 1 : vector<16x128xf32>, i32 -> vector<16x128xf32>
    %98 = arith.mulf %95, %80 : vector<16x128xf32>
    %99 = arith.mulf %93, %96 : vector<16x128xf32>
    %100 = arith.addf %98, %99 : vector<16x128xf32>
    %101 = math.tanh %100 : vector<16x128xf32>
    %102 = arith.mulf %97, %101 : vector<16x128xf32>
    %c4 = arith.constant 4 : index
    %c0_38 = arith.constant 0 : index
    %c0_39 = arith.constant 0 : index
    %103 = vector.load %arg4[%c4, %c0_38, %c0_39] : memref<8x16x128xf32, #tpu.memory_space<vmem>>, vector<1x16x128xf32>
    %104 = vector.shape_cast %103 : vector<1x16x128xf32> to vector<16x128xf32>
    %105 = vector.shape_cast %102 : vector<16x128xf32> to vector<1x16x128xf32>
    tpu.vector_store %arg4[%c4, %c0_38, %c0_39], %105 {strides = array<i32>} : memref<8x16x128xf32, #tpu.memory_space<vmem>>, vector<1x16x128xf32>,
    %106 = vector.extract_strided_slice %2 {offsets = [80, 0], sizes = [16, 128], strides = [1, 1]} : vector<128x128xf32> to vector<16x128xf32>
    %cst_40 = arith.constant dense<0.000000e+00> : vector<16x128xf32>
    %107 = tpu.matmul %102, %3, %cst_40 {dimension_numbers = #tpu.dot_dimension_numbers<[1], [0], [0], [1], [0, 0, 1, 1], [], []>} : vector<16x128xf32>, vector<128x128xf32>, vector<16x128xf32> -> vector<16x128xf32>
    %108 = arith.addf %106, %107 : vector<16x128xf32>
    %109 = arith.negf %108 : vector<16x128xf32>
    %110 = math.exp %109 : vector<16x128xf32>
    %cst_41 = arith.constant 1.000000e+00 : f32
    %111 = vector.broadcast %cst_41 : f32 to vector<16x128xf32>
    %112 = arith.addf %111, %110 : vector<16x128xf32>
    %113 = arith.divf %111, %112 : vector<16x128xf32>
    %114 = math.tanh %108 : vector<16x128xf32>
    %c96_i32_42 = arith.constant 96 : i32
    %115 = tpu.dynamic_rotate %113 by %c96_i32_42 dim 1 : vector<16x128xf32>, i32 -> vector<16x128xf32>
    %c64_i32_43 = arith.constant 64 : i32
    %116 = tpu.dynamic_rotate %114 by %c64_i32_43 dim 1 : vector<16x128xf32>, i32 -> vector<16x128xf32>
    %c32_i32_44 = arith.constant 32 : i32
    %117 = tpu.dynamic_rotate %113 by %c32_i32_44 dim 1 : vector<16x128xf32>, i32 -> vector<16x128xf32>
    %118 = arith.mulf %115, %100 : vector<16x128xf32>
    %119 = arith.mulf %113, %116 : vector<16x128xf32>
    %120 = arith.addf %118, %119 : vector<16x128xf32>
    %121 = math.tanh %120 : vector<16x128xf32>
    %122 = arith.mulf %117, %121 : vector<16x128xf32>
    %c5 = arith.constant 5 : index
    %c0_45 = arith.constant 0 : index
    %c0_46 = arith.constant 0 : index
    %123 = vector.load %arg4[%c5, %c0_45, %c0_46] : memref<8x16x128xf32, #tpu.memory_space<vmem>>, vector<1x16x128xf32>
    %124 = vector.shape_cast %123 : vector<1x16x128xf32> to vector<16x128xf32>
    %125 = vector.shape_cast %122 : vector<16x128xf32> to vector<1x16x128xf32>
    tpu.vector_store %arg4[%c5, %c0_45, %c0_46], %125 {strides = array<i32>} : memref<8x16x128xf32, #tpu.memory_space<vmem>>, vector<1x16x128xf32>,
    %126 = vector.extract_strided_slice %2 {offsets = [96, 0], sizes = [16, 128], strides = [1, 1]} : vector<128x128xf32> to vector<16x128xf32>
    %cst_47 = arith.constant dense<0.000000e+00> : vector<16x128xf32>
    %127 = tpu.matmul %122, %3, %cst_47 {dimension_numbers = #tpu.dot_dimension_numbers<[1], [0], [0], [1], [0, 0, 1, 1], [], []>} : vector<16x128xf32>, vector<128x128xf32>, vector<16x128xf32> -> vector<16x128xf32>
    %128 = arith.addf %126, %127 : vector<16x128xf32>
    %129 = arith.negf %128 : vector<16x128xf32>
    %130 = math.exp %129 : vector<16x128xf32>
    %cst_48 = arith.constant 1.000000e+00 : f32
    %131 = vector.broadcast %cst_48 : f32 to vector<16x128xf32>
    %132 = arith.addf %131, %130 : vector<16x128xf32>
    %133 = arith.divf %131, %132 : vector<16x128xf32>
    %134 = math.tanh %128 : vector<16x128xf32>
    %c96_i32_49 = arith.constant 96 : i32
    %135 = tpu.dynamic_rotate %133 by %c96_i32_49 dim 1 : vector<16x128xf32>, i32 -> vector<16x128xf32>
    %c64_i32_50 = arith.constant 64 : i32
    %136 = tpu.dynamic_rotate %134 by %c64_i32_50 dim 1 : vector<16x128xf32>, i32 -> vector<16x128xf32>
    %c32_i32_51 = arith.constant 32 : i32
    %137 = tpu.dynamic_rotate %133 by %c32_i32_51 dim 1 : vector<16x128xf32>, i32 -> vector<16x128xf32>
    %138 = arith.mulf %135, %120 : vector<16x128xf32>
    %139 = arith.mulf %133, %136 : vector<16x128xf32>
    %140 = arith.addf %138, %139 : vector<16x128xf32>
    %141 = math.tanh %140 : vector<16x128xf32>
    %142 = arith.mulf %137, %141 : vector<16x128xf32>
    %c6 = arith.constant 6 : index
    %c0_52 = arith.constant 0 : index
    %c0_53 = arith.constant 0 : index
    %143 = vector.load %arg4[%c6, %c0_52, %c0_53] : memref<8x16x128xf32, #tpu.memory_space<vmem>>, vector<1x16x128xf32>
    %144 = vector.shape_cast %143 : vector<1x16x128xf32> to vector<16x128xf32>
    %145 = vector.shape_cast %142 : vector<16x128xf32> to vector<1x16x128xf32>
    tpu.vector_store %arg4[%c6, %c0_52, %c0_53], %145 {strides = array<i32>} : memref<8x16x128xf32, #tpu.memory_space<vmem>>, vector<1x16x128xf32>,
    %146 = vector.extract_strided_slice %2 {offsets = [112, 0], sizes = [16, 128], strides = [1, 1]} : vector<128x128xf32> to vector<16x128xf32>
    %cst_54 = arith.constant dense<0.000000e+00> : vector<16x128xf32>
    %147 = tpu.matmul %142, %3, %cst_54 {dimension_numbers = #tpu.dot_dimension_numbers<[1], [0], [0], [1], [0, 0, 1, 1], [], []>} : vector<16x128xf32>, vector<128x128xf32>, vector<16x128xf32> -> vector<16x128xf32>
    %148 = arith.addf %146, %147 : vector<16x128xf32>
    %149 = arith.negf %148 : vector<16x128xf32>
    %150 = math.exp %149 : vector<16x128xf32>
    %cst_55 = arith.constant 1.000000e+00 : f32
    %151 = vector.broadcast %cst_55 : f32 to vector<16x128xf32>
    %152 = arith.addf %151, %150 : vector<16x128xf32>
    %153 = arith.divf %151, %152 : vector<16x128xf32>
    %154 = math.tanh %148 : vector<16x128xf32>
    %c96_i32_56 = arith.constant 96 : i32
    %155 = tpu.dynamic_rotate %153 by %c96_i32_56 dim 1 : vector<16x128xf32>, i32 -> vector<16x128xf32>
    %c64_i32_57 = arith.constant 64 : i32
    %156 = tpu.dynamic_rotate %154 by %c64_i32_57 dim 1 : vector<16x128xf32>, i32 -> vector<16x128xf32>
    %c32_i32_58 = arith.constant 32 : i32
    %157 = tpu.dynamic_rotate %153 by %c32_i32_58 dim 1 : vector<16x128xf32>, i32 -> vector<16x128xf32>
    %158 = arith.mulf %155, %140 : vector<16x128xf32>
    %159 = arith.mulf %153, %156 : vector<16x128xf32>
    %160 = arith.addf %158, %159 : vector<16x128xf32>
    %161 = math.tanh %160 : vector<16x128xf32>
    %162 = arith.mulf %157, %161 : vector<16x128xf32>
    %c7 = arith.constant 7 : index
    %c0_59 = arith.constant 0 : index
    %c0_60 = arith.constant 0 : index
    %163 = vector.load %arg4[%c7, %c0_59, %c0_60] : memref<8x16x128xf32, #tpu.memory_space<vmem>>, vector<1x16x128xf32>
    %164 = vector.shape_cast %163 : vector<1x16x128xf32> to vector<16x128xf32>
    %165 = vector.shape_cast %162 : vector<16x128xf32> to vector<1x16x128xf32>
    tpu.vector_store %arg4[%c7, %c0_59, %c0_60], %165 {strides = array<i32>} : memref<8x16x128xf32, #tpu.memory_space<vmem>>, vector<1x16x128xf32>,
    return
  }
  func.func @transform_0(%arg0: i32) -> (i32, i32) {
    %c0_i32 = arith.constant 0 : i32
    %c0_i32_0 = arith.constant 0 : i32
    %c0_i32_1 = arith.constant 0 : i32
    return %c0_i32, %c0_i32_0 : i32, i32
  }
  func.func @transform_1(%arg0: i32) -> (i32, i32) {
    %c0_i32 = arith.constant 0 : i32
    %c0_i32_0 = arith.constant 0 : i32
    %c0_i32_1 = arith.constant 0 : i32
    return %c0_i32, %c0_i32_0 : i32, i32
  }
  func.func @transform_2(%arg0: i32) -> (i32, i32) {
    %c0_i32 = arith.constant 0 : i32
    %c0_i32_0 = arith.constant 0 : i32
    %c0_i32_1 = arith.constant 0 : i32
    return %c0_i32, %c0_i32_0 : i32, i32
  }
  func.func @transform_3(%arg0: i32) -> (i32, i32, i32) {
    %c0_i32 = arith.constant 0 : i32
    %c0_i32_0 = arith.constant 0 : i32
    %c0_i32_1 = arith.constant 0 : i32
    %c0_i32_2 = arith.constant 0 : i32
    return %c0_i32, %c0_i32_0, %c0_i32_1 : i32, i32, i32
  }
}

</mosaic_0001>

<bundles_post_ra>
// kernel: lstm_forward.1
= control target key start
LH: loop header
LB: loop body
LE: loop exit
PB: predicated region body
PF: predicated region fallthrough
CT: control target
= control target key end

     0   :  { %vm31_vm0 = vcmask 64512   ;;  %v1062_v19 = vmov 0.0   ;;  %s1064_s22 = smov 96   ;;  %s1065_s23 = smov 64   ;;  %s1513_s2 = inlined_call_operand.vmem [shape: f32[128,128], index: 2, kind: input, shape index: {}]   ;;  %s1514_s1 = inlined_call_operand.vmem [shape: f32[8,128], index: 1, kind: input, shape index: {}]   ;;  %s1515_s0 = inlined_call_operand.vmem [shape: f32[128,8], index: 0, kind: input, shape index: {}]   ;;  %s1516_s3 = inlined_call_operand.vmem [shape: f32[8,16,128], index: 3, kind: output, shape index: {}]  }
   0x1   :  { %v1089_v0 = vld [vmem:[%s1513_s2 + $0x78] sm:$0xff]  ;;  %v1094_v1 = vld [vmem:[%s1513_s2 + $0x70] sm:$0xff]  ;;  %v1101_v2 = vld [vmem:[%s1513_s2 + $0x68] sm:$0xff] }
   0x2   :  { %161 = vmatpush.msra.mxu1 %v1089_v0  ;;  %250 = vmatpush.msra.mxu2 %v1089_v0  ;;  %v1109_v3 = vld [vmem:[%s1513_s2 + $0x60] sm:$0xff]  ;;  %v1123_v6 = vld [vmem:[%s1513_s2 + $0x58] sm:$0xff]  ;;  %v1131_v7 = vld [vmem:[%s1513_s2 + $0x50] sm:$0xff] }
   0x3   :  { %340 = vmatpush.msra.mxu3 %v1089_v0  ;;  %v30_v4 = vld [vmem:[%s1514_s1] sm:$0xff]  ;;  %v1139_v8 = vld [vmem:[%s1513_s2 + $0x48] sm:$0xff]  ;;  %v1158_v11 = vld [vmem:[%s1513_s2 + $0x38] sm:$0xff] }
   0x4   :  { %162 = vmatpush.msra.mxu1 %v1094_v1  ;;  %251 = vmatpush.msra.mxu2 %v1094_v1  ;;  %v14_v5 = vld [vmem:[%s1515_s0] sm:$0xff]  ;;  %v15_v10 = vld [vmem:[%s1515_s0 + $0x8] sm:$0xff]  ;;  %v1167_v12 = vld [vmem:[%s1513_s2 + $0x30] sm:$0xff] }
   0x5   :  { %341 = vmatpush.msra.mxu3 %v1094_v1  ;;  %95 = vmatpush.msra.mxu0 %v30_v4  ;;  %v1147_v9 = vld [vmem:[%s1513_s2 + $0x40] sm:$0xff]  ;;  %v1175_v13 = vld [vmem:[%s1513_s2 + $0x28] sm:$0xff]  ;;  %v1191_v15 = vld [vmem:[%s1513_s2 + $0x18] sm:$0xff] }
   0x6   :  { %163 = vmatpush.msra.mxu1 %v1101_v2  ;;  %252 = vmatpush.msra.mxu2 %v1101_v2  ;;  %v1183_v14 = vld [vmem:[%s1513_s2 + $0x20] sm:$0xff]  ;;  %v1199_v16 = vld [vmem:[%s1513_s2 + $0x10] sm:$0xff]  ;;  %v1207_v17 = vld [vmem:[%s1513_s2 + $0x8] sm:$0xff] }
   0x7   :  { %342 = vmatpush.msra.mxu3 %v1101_v2  ;;  %884 = vmatmul.msk.f32.vlgmr.msra.gmra.mxu0 %vm31_vm0, %v14_v5  ;;  %v1215_v18 = vld [vmem:[%s1513_s2] sm:$0xff]  ;;  %s1063_s2 = smov 32   ;;  %v16_v54 = vld [vmem:[%s1515_s0 + $0x10] sm:$0xff]  ;;  %v17_v56 = vld [vmem:[%s1515_s0 + $0x18] sm:$0xff] }
   0x8   :  { %164 = vmatpush.msra.mxu1 %v1109_v3  ;;  %253 = vmatpush.msra.mxu2 %v1109_v3 }
   0x9   :  { %343 = vmatpush.msra.mxu3 %v1109_v3 }
   0xa   :  { %165 = vmatpush.msra.mxu1 %v1123_v6  ;;  %254 = vmatpush.msra.mxu2 %v1123_v6 }
   0xb   :  { %344 = vmatpush.msra.mxu3 %v1123_v6 }
   0xc   :  { %166 = vmatpush.msra.mxu1 %v1131_v7  ;;  %255 = vmatpush.msra.mxu2 %v1131_v7 }
   0xd   :  { %345 = vmatpush.msra.mxu3 %v1131_v7 }
   0xe   :  { %167 = vmatpush.msra.mxu1 %v1139_v8  ;;  %256 = vmatpush.msra.mxu2 %v1139_v8 }
   0xf   :  { %346 = vmatpush.msra.mxu3 %v1139_v8  ;;  %885 = vmatmul.msk.f32.gmra.mxu0 %vm31_vm0, %v15_v10 }
  0x10   :  { %168 = vmatpush.msra.mxu1 %v1147_v9  ;;  %257 = vmatpush.msra.mxu2 %v1147_v9 }
  0x11   :  { %347 = vmatpush.msra.mxu3 %v1147_v9 }
  0x12   :  { %169 = vmatpush.msra.mxu1 %v1158_v11  ;;  %258 = vmatpush.msra.mxu2 %v1158_v11 }
  0x13   :  { %348 = vmatpush.msra.mxu3 %v1158_v11 }
  0x14   :  { %170 = vmatpush.msra.mxu1 %v1167_v12  ;;  %259 = vmatpush.msra.mxu2 %v1167_v12 }
  0x15   :  { %349 = vmatpush.msra.mxu3 %v1167_v12 }
  0x16   :  { %171 = vmatpush.msra.mxu1 %v1175_v13  ;;  %260 = vmatpush.msra.mxu2 %v1175_v13 }
  0x17   :  { %350 = vmatpush.msra.mxu3 %v1175_v13  ;;  %886 = vmatmul.msk.f32.gmra.mxu0 %vm31_vm0, %v16_v54 }
  0x18   :  { %172 = vmatpush.msra.mxu1 %v1183_v14  ;;  %261 = vmatpush.msra.mxu2 %v1183_v14 }
  0x19   :  { %351 = vmatpush.msra.mxu3 %v1183_v14 }
  0x1a   :  { %173 = vmatpush.msra.mxu1 %v1191_v15  ;;  %262 = vmatpush.msra.mxu2 %v1191_v15 }
  0x1b   :  { %352 = vmatpush.msra.mxu3 %v1191_v15 }
  0x1c   :  { %174 = vmatpush.msra.mxu1 %v1199_v16  ;;  %263 = vmatpush.msra.mxu2 %v1199_v16 }
  0x1d   :  { %353 = vmatpush.msra.mxu3 %v1199_v16 }
  0x1e   :  { %175 = vmatpush.msra.mxu1 %v1207_v17  ;;  %264 = vmatpush.msra.mxu2 %v1207_v17 }
  0x1f   :  { %354 = vmatpush.msra.mxu3 %v1207_v17  ;;  %887 = vmatmul.msk.f32.gmra.mxu0 %vm31_vm0, %v17_v56 }
  0x20   :  { %176 = vmatpush.msra.mxu1 %v1215_v18  ;;  %265 = vmatpush.msra.mxu2 %v1215_v18 }
  0x21   :  { %177 = vmatmul.f32.vlgmr.msra.gmra.mxu1 %v1062_v19  ;;  %355 = vmatpush.msra.mxu3 %v1215_v18 }
  0x22   :  { %430 = vmatpush.msrb.mxu1 %v1089_v0  ;;  %520 = vmatpush.msrb.mxu2 %v1089_v0 }
  0x23   :  { %610 = vmatpush.msrb.mxu3 %v1089_v0 }
  0x24   :  { %431 = vmatpush.msrb.mxu1 %v1094_v1  ;;  %521 = vmatpush.msrb.mxu2 %v1094_v1 }
  0x25   :  { %611 = vmatpush.msrb.mxu3 %v1094_v1 }
  0x26   :  { %432 = vmatpush.msrb.mxu1 %v1101_v2  ;;  %522 = vmatpush.msrb.mxu2 %v1101_v2 }
  0x27   :  { %612 = vmatpush.msrb.mxu3 %v1101_v2 }
  0x28   :  { %433 = vmatpush.msrb.mxu1 %v1109_v3  ;;  %523 = vmatpush.msrb.mxu2 %v1109_v3 }
  0x29   :  { %180 = vmatmul.f32.gmra.mxu1 %v1062_v19  ;;  %613 = vmatpush.msrb.mxu3 %v1109_v3 }
  0x2a   :  { %434 = vmatpush.msrb.mxu1 %v1123_v6  ;;  %524 = vmatpush.msrb.mxu2 %v1123_v6 }
  0x2b   :  { %614 = vmatpush.msrb.mxu3 %v1123_v6 }
  0x2c   :  { %435 = vmatpush.msrb.mxu1 %v1131_v7  ;;  %525 = vmatpush.msrb.mxu2 %v1131_v7 }
  0x2d   :  { %615 = vmatpush.msrb.mxu3 %v1131_v7 }
  0x2e   :  { %436 = vmatpush.msrb.mxu1 %v1139_v8  ;;  %526 = vmatpush.msrb.mxu2 %v1139_v8 }
  0x2f   :  { %616 = vmatpush.msrb.mxu3 %v1139_v8 }
  0x30   :  { %437 = vmatpush.msrb.mxu1 %v1147_v9  ;;  %527 = vmatpush.msrb.mxu2 %v1147_v9 }
  0x31   :  { %617 = vmatpush.msrb.mxu3 %v1147_v9 }
  0x32   :  { %438 = vmatpush.msrb.mxu1 %v1158_v11  ;;  %528 = vmatpush.msrb.mxu2 %v1158_v11 }
  0x33   :  { %618 = vmatpush.msrb.mxu3 %v1158_v11 }
  0x34   :  { %439 = vmatpush.msrb.mxu1 %v1167_v12  ;;  %529 = vmatpush.msrb.mxu2 %v1167_v12 }
  0x35   :  { %619 = vmatpush.msrb.mxu3 %v1167_v12 }
  0x36   :  { %440 = vmatpush.msrb.mxu1 %v1175_v13  ;;  %530 = vmatpush.msrb.mxu2 %v1175_v13 }
  0x37   :  { %620 = vmatpush.msrb.mxu3 %v1175_v13 }
  0x38   :  { %441 = vmatpush.msrb.mxu1 %v1183_v14  ;;  %531 = vmatpush.msrb.mxu2 %v1183_v14 }
  0x39   :  { %621 = vmatpush.msrb.mxu3 %v1183_v14 }
  0x3a   :  { %442 = vmatpush.msrb.mxu1 %v1191_v15  ;;  %532 = vmatpush.msrb.mxu2 %v1191_v15 }
  0x3b   :  { %622 = vmatpush.msrb.mxu3 %v1191_v15 }
  0x3c   :  { %443 = vmatpush.msrb.mxu1 %v1199_v16  ;;  %533 = vmatpush.msrb.mxu2 %v1199_v16 }
  0x3d   :  { %623 = vmatpush.msrb.mxu3 %v1199_v16 }
  0x3e   :  { %444 = vmatpush.msrb.mxu1 %v1207_v17  ;;  %534 = vmatpush.msrb.mxu2 %v1207_v17 }
  0x3f   :  { %624 = vmatpush.msrb.mxu3 %v1207_v17 }
  0x40   :  { %445 = vmatpush.msrb.mxu1 %v1215_v18  ;;  %535 = vmatpush.msrb.mxu2 %v1215_v18 }
  0x41   :  { %625 = vmatpush.msrb.mxu3 %v1215_v18 }
  0x42   :  { %700 = vmatpush.msra.mxu1 %v1089_v0 }
  0x44   :  { %701 = vmatpush.msra.mxu1 %v1094_v1 }
  0x46   :  { %702 = vmatpush.msra.mxu1 %v1101_v2 }
  0x48   :  { %703 = vmatpush.msra.mxu1 %v1109_v3 }
  0x4a   :  { %704 = vmatpush.msra.mxu1 %v1123_v6 }
  0x4c   :  { %705 = vmatpush.msra.mxu1 %v1131_v7 }
  0x4e   :  { %706 = vmatpush.msra.mxu1 %v1139_v8 }
  0x50   :  { %707 = vmatpush.msra.mxu1 %v1147_v9 }
  0x52   :  { %708 = vmatpush.msra.mxu1 %v1158_v11 }
  0x54   :  { %709 = vmatpush.msra.mxu1 %v1167_v12 }
  0x56   :  { %710 = vmatpush.msra.mxu1 %v1175_v13 }
  0x58   :  { %711 = vmatpush.msra.mxu1 %v1183_v14 }
  0x5a   :  { %712 = vmatpush.msra.mxu1 %v1191_v15 }
  0x5c   :  { %713 = vmatpush.msra.mxu1 %v1199_v16 }
  0x5e   :  { %714 = vmatpush.msra.mxu1 %v1207_v17 }
  0x60   :  { %715 = vmatpush.msra.mxu1 %v1215_v18 }
  0x84   :  { %v97_v20 = vpop.f32.mrf.mxu0 }
  0x8c   :  { %v100_v24 = vpop.f32.mrf.mxu0 }
  0x9e   :  { %v178_v21 = vpop.f32.mrf.mxu1 }
  0x9f   :  { %v184_v22 = vadd.f32 %v178_v21, %v97_v20 }
  0xa1   :  { %v900_v23 = vmul.f32 -1.442695, %v184_v22 }
  0xa3   :  { %934 = vpow2.f32 %v900_v23 }
  0xa6   :  { %v181_v25 = vpop.f32.mrf.mxu1 }
  0xa7   :  { %v185_v26 = vadd.f32 %v181_v25, %v100_v24 }
  0xa9   :  { %v935_v27 = vpop.eup %934  ;;  %v901_v28 = vmul.f32 -1.442695, %v185_v26 }
  0xaa   :  { %v192_v29 = vadd.f32 1.0, %v935_v27 }
  0xab   :  { %936 = vpow2.f32 %v901_v28 }
  0xac   :  { %938 = vrcp.f32 %v192_v29  ;;  %v205_v35 = vand.u32 2147483648, %v192_v29  ;;  %v203_v37 = vand.u32 2147483647, %v192_v29  ;;  %vm199_vm2 = vweird.f32 %v192_v29 }
  0xae   :  { %v206_v40 = vor.u32 1.1754944e-38, %v205_v35  ;;  %vm204_vm4 = vcmp.eq.f32.partialorder %v203_v37, 8.507059e+37 }
  0xb1   :  { %v937_v30 = vpop.eup %936 }
  0xb2   :  { %v939_v31 = vpop.eup %938  ;;  %v193_v32 = vadd.f32 1.0, %v937_v30 }
  0xb3   :  { %v195_v33 = vmul.f32 %v939_v31, %v192_v29  ;;  %vm200_vm1 = vweird.f32 %v939_v31 }
  0xb4   :  { %940 = vrcp.f32 %v193_v32  ;;  %vm201_vm3 = vmor %vm199_vm2, %vm200_vm1  ;;  %v220_v44 = vand.u32 2147483648, %v193_v32  ;;  %vm214_vm5 = vweird.f32 %v193_v32  ;;  %v218_v46 = vand.u32 2147483647, %v193_v32 }
  0xb5   :  { %v196_v34 = vsub.f32 1.0, %v195_v33  ;;  %942 = vtanh.f32 %v184_v22 }
  0xb6   :  { %v221_v48 = vor.u32 1.1754944e-38, %v220_v44  ;;  %vm219_vm8 = vcmp.eq.f32.partialorder %v218_v46, 8.507059e+37  ;;  %944 = vtanh.f32 %v185_v26 }
  0xb7   :  { %v197_v36 = vmul.f32 %v939_v31, %v196_v34 }
  0xb9   :  { %v198_v38 = vadd.f32 %v939_v31, %v197_v36 }
  0xba   :  { %v941_v39 = vpop.eup %940 }
  0xbb   :  { %v202_v41 = vsel %vm201_vm3, %v939_v31, %v198_v38  ;;  %v210_v42 = vmul.f32 %v941_v39, %v193_v32  ;;  %vm215_vm6 = vweird.f32 %v941_v39  ;;  %v943_v51 = vpop.eup %942 }
  0xbc   :  { %v207_v43 = vsel %vm204_vm4, %v206_v40, %v202_v41  ;;  %vm216_vm7 = vmor %vm214_vm5, %vm215_vm6  ;;  %v945_v53 = vpop.eup %944 }
  0xbd   :  { %234 = vrot.lane.b32.xlu2 %v207_v43, %s1063_s2  ;;  %226 = vrot.lane.b32.xlu0 %v207_v43, %s1064_s22  ;;  %v211_v45 = vsub.f32 1.0, %v210_v42  ;;  %v18_v42 = vld [vmem:[%s1515_s0 + $0x20] sm:$0xff] }
  0xbe   :  { %888 = vmatmul.msk.f32.gmra.mxu0 %vm31_vm0, %v18_v42 }
  0xbf   :  { %v212_v47 = vmul.f32 %v941_v39, %v211_v45 }
  0xc1   :  { %v213_v49 = vadd.f32 %v941_v39, %v212_v47 }
  0xc3   :  { %v217_v50 = vsel %vm216_vm7, %v941_v39, %v213_v49 }
  0xc4   :  { %v222_v52 = vsel %vm219_vm8, %v221_v48, %v217_v50 }
  0xc5   :  { %230 = vrot.lane.b32.xlu0 %v943_v51, %s1065_s23  ;;  %228 = vrot.lane.b32.xlu1 %v222_v52, %s1064_s22 }
  0xc6   :  { %236 = vrot.lane.b32.xlu2 %v222_v52, %s1063_s2 }
  0xcd   :  { %232 = vrot.lane.b32.xlu1 %v945_v53, %s1065_s23 }
 0x117   :  { %v235_v4 = vpop.permute.xlu2 %234 }
 0x120   :  { %v237_v21 = vpop.permute.xlu2 %236 }
 0x12f   :  { %v227_v55 = vpop.permute.xlu0 %226 }
 0x130   :  { %v238_v59 = vmul.f32 0.0, %v227_v55 }
 0x137   :  { %v231_v57 = vpop.permute.xlu0 %230  ;;  %v229_v58 = vpop.permute.xlu1 %228 }
 0x138   :  { %v240_v60 = vmul.f32 %v231_v57, %v207_v43  ;;  %v239_v62 = vmul.f32 0.0, %v229_v58  ;;  %v19_v43 = vld [vmem:[%s1515_s0 + $0x28] sm:$0xff] }
 0x139   :  { %889 = vmatmul.msk.f32.gmra.mxu0 %vm31_vm0, %v19_v43 }
 0x13a   :  { %v1303_v61 = vadd.f32 %v240_v60, %v238_v59 }
 0x13c   :  { %946 = vtanh.f32 %v1303_v61 }
 0x13f   :  { %v233_v63 = vpop.permute.xlu1 %232 }
 0x140   :  { %v241_v5 = vmul.f32 %v233_v63, %v222_v52 }
 0x142   :  { %v947_v10 = vpop.eup %946  ;;  %v1306_v19 = vadd.f32 %v241_v5, %v239_v62 }
 0x143   :  { %v246_v20 = vmul.f32 %v947_v10, %v235_v4 }
 0x144   :  { %948 = vtanh.f32 %v1306_v19 }
 0x145   :  { %248 = vst [vmem:[%s1516_s3] sm:$0xff] %v246_v20  ;;  %266 = vmatmul.f32.vlgmr.msra.gmra.mxu2 %v246_v20 }
 0x146   :  { %790 = vmatpush.msra.mxu2 %v1089_v0  ;;  %v103_v0 = vpop.f32.mrf.mxu0 }
 0x148   :  { %791 = vmatpush.msra.mxu2 %v1094_v1 }
 0x14a   :  { %v949_v22 = vpop.eup %948  ;;  %792 = vmatpush.msra.mxu2 %v1101_v2 }
 0x14b   :  { %v247_v23 = vmul.f32 %v949_v22, %v237_v21 }
 0x14c   :  { %793 = vmatpush.msra.mxu2 %v1109_v3 }
 0x14d   :  { %249 = vst [vmem:[%s1516_s3 + $0x8] sm:$0xff] %v247_v23  ;;  %269 = vmatmul.f32.gmra.mxu2 %v247_v23 }
 0x14e   :  { %794 = vmatpush.msra.mxu2 %v1123_v6  ;;  %v106_v6 = vpop.f32.mrf.mxu0 }
 0x150   :  { %795 = vmatpush.msra.mxu2 %v1131_v7 }
 0x152   :  { %796 = vmatpush.msra.mxu2 %v1139_v8 }
 0x154   :  { %797 = vmatpush.msra.mxu2 %v1147_v9 }
 0x156   :  { %798 = vmatpush.msra.mxu2 %v1158_v11  ;;  %v109_v60 = vpop.f32.mrf.mxu0 }
 0x158   :  { %799 = vmatpush.msra.mxu2 %v1167_v12 }
 0x15a   :  { %800 = vmatpush.msra.mxu2 %v1175_v13 }
 0x15c   :  { %801 = vmatpush.msra.mxu2 %v1183_v14 }
 0x15e   :  { %802 = vmatpush.msra.mxu2 %v1191_v15 }
 0x160   :  { %803 = vmatpush.msra.mxu2 %v1199_v16 }
 0x162   :  { %804 = vmatpush.msra.mxu2 %v1207_v17 }
 0x164   :  { %805 = vmatpush.msra.mxu2 %v1215_v18 }
 0x1b6   :  { %v112_v4 = vpop.f32.mrf.mxu0 }
 0x1c8   :  { %v267_v1 = vpop.f32.mrf.mxu2 }
 0x1c9   :  { %v273_v2 = vadd.f32 %v267_v1, %v103_v0 }
 0x1cb   :  { %v902_v3 = vmul.f32 -1.442695, %v273_v2  ;;  %950 = vtanh.f32 %v273_v2 }
 0x1cd   :  { %952 = vpow2.f32 %v902_v3 }
 0x1d0   :  { %v270_v7 = vpop.f32.mrf.mxu2 }
 0x1d1   :  { %v951_v8 = vpop.eup %950  ;;  %v274_v9 = vadd.f32 %v270_v7, %v106_v6 }
 0x1d2   :  { %319 = vrot.lane.b32.xlu1 %v951_v8, %s1065_s23 }
 0x1d3   :  { %v953_v11 = vpop.eup %952  ;;  %v903_v12 = vmul.f32 -1.442695, %v274_v9 }
 0x1d4   :  { %v281_v13 = vadd.f32 1.0, %v953_v11 }
 0x1d5   :  { %954 = vpow2.f32 %v903_v12 }
 0x1d6   :  { %956 = vrcp.f32 %v281_v13  ;;  %v294_v24 = vand.u32 2147483648, %v281_v13  ;;  %v292_v26 = vand.u32 2147483647, %v281_v13  ;;  %vm288_vm10 = vweird.f32 %v281_v13 }
 0x1d8   :  { %v295_v29 = vor.u32 1.1754944e-38, %v294_v24  ;;  %vm293_vm12 = vcmp.eq.f32.partialorder %v292_v26, 8.507059e+37 }
 0x1db   :  { %v955_v14 = vpop.eup %954 }
 0x1dc   :  { %v957_v15 = vpop.eup %956  ;;  %v282_v16 = vadd.f32 1.0, %v955_v14 }
 0x1dd   :  { %v284_v17 = vmul.f32 %v957_v15, %v281_v13  ;;  %vm289_vm9 = vweird.f32 %v957_v15 }
 0x1de   :  { %958 = vrcp.f32 %v282_v16  ;;  %vm290_vm11 = vmor %vm288_vm10, %vm289_vm9  ;;  %v309_v34 = vand.u32 2147483648, %v282_v16  ;;  %v307_v36 = vand.u32 2147483647, %v282_v16  ;;  %vm303_vm14 = vweird.f32 %v282_v16 }
 0x1df   :  { %v285_v18 = vsub.f32 1.0, %v284_v17  ;;  %960 = vtanh.f32 %v274_v9 }
 0x1e0   :  { %v310_v38 = vor.u32 1.1754944e-38, %v309_v34  ;;  %vm308_vm1 = vcmp.eq.f32.partialorder %v307_v36, 8.507059e+37 }
 0x1e1   :  { %v286_v25 = vmul.f32 %v957_v15, %v285_v18 }
 0x1e3   :  { %v287_v27 = vadd.f32 %v957_v15, %v286_v25 }
 0x1e4   :  { %v959_v28 = vpop.eup %958 }
 0x1e5   :  { %v291_v30 = vsel %vm290_vm11, %v957_v15, %v287_v27  ;;  %v299_v31 = vmul.f32 %v959_v28, %v282_v16  ;;  %vm304_vm13 = vweird.f32 %v959_v28  ;;  %v961_v40 = vpop.eup %960 }
 0x1e6   :  { %v296_v32 = vsel %vm293_vm12, %v295_v29, %v291_v30  ;;  %vm305_vm15 = vmor %vm303_vm14, %vm304_vm13  ;;  %v20_v30 = vld [vmem:[%s1515_s0 + $0x30] sm:$0xff] }
 0x1e7   :  { %323 = vrot.lane.b32.xlu1 %v296_v32, %s1063_s2  ;;  %315 = vrot.lane.b32.xlu0 %v296_v32, %s1064_s22  ;;  %v300_v33 = vsub.f32 1.0, %v299_v31  ;;  %v21_v31 = vld [vmem:[%s1515_s0 + $0x38] sm:$0xff] }
 0x1e8   :  { %890 = vmatmul.msk.f32.gmra.mxu0 %vm31_vm0, %v20_v30 }
 0x1e9   :  { %v301_v35 = vmul.f32 %v959_v28, %v300_v33 }
 0x1eb   :  { %v302_v37 = vadd.f32 %v959_v28, %v301_v35 }
 0x1ed   :  { %v306_v39 = vsel %vm305_vm15, %v959_v28, %v302_v37 }
 0x1ee   :  { %v311_v41 = vsel %vm308_vm1, %v310_v38, %v306_v39 }
 0x1ef   :  { %321 = vrot.lane.b32.xlu0 %v961_v40, %s1065_s23  ;;  %317 = vrot.lane.b32.xlu2 %v311_v41, %s1064_s22 }
 0x1f0   :  { %891 = vmatmul.msk.f32.gmra.mxu0 %vm31_vm0, %v21_v31 }
 0x1f7   :  { %325 = vrot.lane.b32.xlu2 %v311_v41, %s1063_s2 }
 0x244   :  { %v320_v44 = vpop.permute.xlu1 %319 }
 0x245   :  { %v329_v46 = vmul.f32 %v320_v44, %v296_v32 }
 0x249   :  { %v318_v49 = vpop.permute.xlu2 %317 }
 0x24a   :  { %v328_v51 = vmul.f32 %v318_v49, %v1306_v19 }
 0x251   :  { %v326_v58 = vpop.permute.xlu2 %325 }
 0x259   :  { %v316_v45 = vpop.permute.xlu0 %315  ;;  %v324_v54 = vpop.permute.xlu1 %323 }
 0x25a   :  { %v327_v47 = vmul.f32 %v316_v45, %v1303_v61 }
 0x25c   :  { %v1346_v48 = vadd.f32 %v329_v46, %v327_v47 }
 0x25e   :  { %962 = vtanh.f32 %v1346_v48 }
 0x261   :  { %v322_v50 = vpop.permute.xlu0 %321 }
 0x262   :  { %v330_v52 = vmul.f32 %v322_v50, %v311_v41 }
 0x264   :  { %v963_v53 = vpop.eup %962  ;;  %v1350_v55 = vadd.f32 %v330_v52, %v328_v51 }
 0x265   :  { %v335_v56 = vmul.f32 %v963_v53, %v324_v54 }
 0x266   :  { %964 = vtanh.f32 %v1350_v55 }
 0x267   :  { %904 = vst [vmem:[%s1516_s3 + $0x10] sm:$0xff] %v335_v56  ;;  %356 = vmatmul.f32.vlgmr.msra.gmra.mxu3 %v335_v56 }
 0x26c   :  { %v965_v57 = vpop.eup %964 }
 0x26d   :  { %v336_v59 = vmul.f32 %v965_v57, %v326_v58 }
 0x26f   :  { %905 = vst [vmem:[%s1516_s3 + $0x18] sm:$0xff] %v336_v59  ;;  %359 = vmatmul.f32.gmra.mxu3 %v336_v59 }
 0x2ea   :  { %v357_v61 = vpop.f32.mrf.mxu3 }
 0x2eb   :  { %v363_v62 = vadd.f32 %v357_v61, %v109_v60 }
 0x2ed   :  { %v906_v63 = vmul.f32 -1.442695, %v363_v62  ;;  %966 = vtanh.f32 %v363_v62 }
 0x2ef   :  { %968 = vpow2.f32 %v906_v63 }
 0x2f2   :  { %v360_v5 = vpop.f32.mrf.mxu3 }
 0x2f3   :  { %v967_v10 = vpop.eup %966  ;;  %v364_v19 = vadd.f32 %v360_v5, %v112_v4 }
 0x2f4   :  { %409 = vrot.lane.b32.xlu1 %v967_v10, %s1065_s23 }
 0x2f5   :  { %v969_v20 = vpop.eup %968  ;;  %v907_v21 = vmul.f32 -1.442695, %v364_v19 }
 0x2f6   :  { %v371_v22 = vadd.f32 1.0, %v969_v20 }
 0x2f7   :  { %970 = vpow2.f32 %v907_v21 }
 0x2f8   :  { %972 = vrcp.f32 %v371_v22  ;;  %v384_v6 = vand.u32 2147483648, %v371_v22  ;;  %v382_v8 = vand.u32 2147483647, %v371_v22  ;;  %vm378_vm3 = vweird.f32 %v371_v22 }
 0x2fa   :  { %v385_v12 = vor.u32 1.1754944e-38, %v384_v6  ;;  %vm383_vm5 = vcmp.eq.f32.partialorder %v382_v8, 8.507059e+37 }
 0x2fd   :  { %v971_v23 = vpop.eup %970 }
 0x2fe   :  { %v973_v0 = vpop.eup %972  ;;  %v372_v1 = vadd.f32 1.0, %v971_v23 }
 0x2ff   :  { %v374_v2 = vmul.f32 %v973_v0, %v371_v22  ;;  %vm379_vm2 = vweird.f32 %v973_v0 }
 0x300   :  { %974 = vrcp.f32 %v372_v1  ;;  %vm380_vm4 = vmor %vm378_vm3, %vm379_vm2  ;;  %v399_v17 = vand.u32 2147483648, %v372_v1  ;;  %v397_v24 = vand.u32 2147483647, %v372_v1  ;;  %vm393_vm7 = vweird.f32 %v372_v1 }
 0x301   :  { %v375_v3 = vsub.f32 1.0, %v374_v2  ;;  %976 = vtanh.f32 %v364_v19 }
 0x302   :  { %v400_v26 = vor.u32 1.1754944e-38, %v399_v17  ;;  %vm398_vm9 = vcmp.eq.f32.partialorder %v397_v24, 8.507059e+37 }
 0x303   :  { %v376_v7 = vmul.f32 %v973_v0, %v375_v3 }
 0x305   :  { %v377_v9 = vadd.f32 %v973_v0, %v376_v7 }
 0x306   :  { %v975_v11 = vpop.eup %974 }
 0x307   :  { %v381_v13 = vsel %vm380_vm4, %v973_v0, %v377_v9  ;;  %v389_v14 = vmul.f32 %v975_v11, %v372_v1  ;;  %vm394_vm6 = vweird.f32 %v975_v11  ;;  %v977_v28 = vpop.eup %976 }
 0x308   :  { %v386_v15 = vsel %vm383_vm5, %v385_v12, %v381_v13  ;;  %vm395_vm8 = vmor %vm393_vm7, %vm394_vm6  ;;  %v22_v13 = vld [vmem:[%s1515_s0 + $0x40] sm:$0xff] }
 0x309   :  { %413 = vrot.lane.b32.xlu1 %v386_v15, %s1063_s2  ;;  %405 = vrot.lane.b32.xlu0 %v386_v15, %s1064_s22  ;;  %v390_v16 = vsub.f32 1.0, %v389_v14  ;;  %v23_v14 = vld [vmem:[%s1515_s0 + $0x48] sm:$0xff] }
 0x30a   :  { %892 = vmatmul.msk.f32.gmra.mxu0 %vm31_vm0, %v22_v13 }
 0x30b   :  { %v391_v18 = vmul.f32 %v975_v11, %v390_v16 }
 0x30d   :  { %v392_v25 = vadd.f32 %v975_v11, %v391_v18 }
 0x30f   :  { %v396_v27 = vsel %vm395_vm8, %v975_v11, %v392_v25 }
 0x310   :  { %v401_v29 = vsel %vm398_vm9, %v400_v26, %v396_v27 }
 0x311   :  { %411 = vrot.lane.b32.xlu0 %v977_v28, %s1065_s23  ;;  %407 = vrot.lane.b32.xlu2 %v401_v29, %s1064_s22 }
 0x312   :  { %893 = vmatmul.msk.f32.gmra.mxu0 %vm31_vm0, %v23_v14 }
 0x319   :  { %415 = vrot.lane.b32.xlu2 %v401_v29, %s1063_s2 }
 0x366   :  { %v410_v32 = vpop.permute.xlu1 %409 }
 0x367   :  { %v419_v34 = vmul.f32 %v410_v32, %v386_v15 }
 0x36b   :  { %v408_v37 = vpop.permute.xlu2 %407 }
 0x36c   :  { %v418_v39 = vmul.f32 %v408_v37, %v1350_v55 }
 0x373   :  { %v416_v46 = vpop.permute.xlu2 %415 }
 0x37b   :  { %v406_v33 = vpop.permute.xlu0 %405  ;;  %v414_v42 = vpop.permute.xlu1 %413 }
 0x37c   :  { %v417_v35 = vmul.f32 %v406_v33, %v1346_v48  ;;  %v115_v48 = vpop.f32.mrf.mxu0 }
 0x37e   :  { %v1374_v36 = vadd.f32 %v419_v34, %v417_v35 }
 0x380   :  { %978 = vtanh.f32 %v1374_v36 }
 0x383   :  { %v412_v38 = vpop.permute.xlu0 %411 }
 0x384   :  { %v420_v40 = vmul.f32 %v412_v38, %v401_v29  ;;  %v118_v52 = vpop.f32.mrf.mxu0 }
 0x386   :  { %v979_v41 = vpop.eup %978  ;;  %v1378_v43 = vadd.f32 %v420_v40, %v418_v39 }
 0x387   :  { %v425_v44 = vmul.f32 %v979_v41, %v414_v42 }
 0x388   :  { %980 = vtanh.f32 %v1378_v43 }
 0x389   :  { %908 = vst [vmem:[%s1516_s3 + $0x20] sm:$0xff] %v425_v44  ;;  %446 = vmatmul.f32.vlgmr.msrb.gmra.mxu1 %v425_v44 }
 0x38e   :  { %v981_v45 = vpop.eup %980 }
 0x38f   :  { %v426_v47 = vmul.f32 %v981_v45, %v416_v46 }
 0x391   :  { %909 = vst [vmem:[%s1516_s3 + $0x28] sm:$0xff] %v426_v47  ;;  %449 = vmatmul.f32.gmra.mxu1 %v426_v47 }
 0x406   :  { %v447_v49 = vpop.f32.mrf.mxu1 }
 0x407   :  { %v453_v50 = vadd.f32 %v447_v49, %v115_v48 }
 0x409   :  { %v910_v51 = vmul.f32 -1.442695, %v453_v50  ;;  %982 = vtanh.f32 %v453_v50 }
 0x40b   :  { %984 = vpow2.f32 %v910_v51 }
 0x40e   :  { %v450_v53 = vpop.f32.mrf.mxu1 }
 0x40f   :  { %v983_v54 = vpop.eup %982  ;;  %v454_v55 = vadd.f32 %v450_v53, %v118_v52 }
 0x410   :  { %499 = vrot.lane.b32.xlu1 %v983_v54, %s1065_s23 }
 0x411   :  { %v985_v56 = vpop.eup %984  ;;  %v911_v57 = vmul.f32 -1.442695, %v454_v55 }
 0x412   :  { %v461_v58 = vadd.f32 1.0, %v985_v56 }
 0x413   :  { %986 = vpow2.f32 %v911_v57 }
 0x414   :  { %988 = vrcp.f32 %v461_v58  ;;  %v474_v4 = vand.u32 2147483648, %v461_v58  ;;  %v472_v10 = vand.u32 2147483647, %v461_v58  ;;  %vm468_vm11 = vweird.f32 %v461_v58 }
 0x416   :  { %v475_v21 = vor.u32 1.1754944e-38, %v474_v4  ;;  %vm473_vm13 = vcmp.eq.f32.partialorder %v472_v10, 8.507059e+37 }
 0x419   :  { %v987_v59 = vpop.eup %986 }
 0x41a   :  { %v989_v60 = vpop.eup %988  ;;  %v462_v61 = vadd.f32 1.0, %v987_v59 }
 0x41b   :  { %v464_v62 = vmul.f32 %v989_v60, %v461_v58  ;;  %vm469_vm10 = vweird.f32 %v989_v60 }
 0x41c   :  { %990 = vrcp.f32 %v462_v61  ;;  %vm470_vm12 = vmor %vm468_vm11, %vm469_vm10  ;;  %v489_v2 = vand.u32 2147483648, %v462_v61  ;;  %v487_v6 = vand.u32 2147483647, %v462_v61  ;;  %vm483_vm15 = vweird.f32 %v462_v61 }
 0x41d   :  { %v465_v63 = vsub.f32 1.0, %v464_v62  ;;  %992 = vtanh.f32 %v454_v55 }
 0x41e   :  { %v490_v8 = vor.u32 1.1754944e-38, %v489_v2  ;;  %vm488_vm2 = vcmp.eq.f32.partialorder %v487_v6, 8.507059e+37 }
 0x41f   :  { %v466_v5 = vmul.f32 %v989_v60, %v465_v63 }
 0x421   :  { %v467_v19 = vadd.f32 %v989_v60, %v466_v5 }
 0x422   :  { %v991_v20 = vpop.eup %990 }
 0x423   :  { %v471_v22 = vsel %vm470_vm12, %v989_v60, %v467_v19  ;;  %v479_v23 = vmul.f32 %v991_v20, %v462_v61  ;;  %vm484_vm14 = vweird.f32 %v991_v20  ;;  %v993_v11 = vpop.eup %992 }
 0x424   :  { %v476_v0 = vsel %vm473_vm13, %v475_v21, %v471_v22  ;;  %vm485_vm1 = vmor %vm483_vm15, %vm484_vm14  ;;  %v24_v22 = vld [vmem:[%s1515_s0 + $0x50] sm:$0xff] }
 0x425   :  { %503 = vrot.lane.b32.xlu1 %v476_v0, %s1063_s2  ;;  %495 = vrot.lane.b32.xlu0 %v476_v0, %s1064_s22  ;;  %v480_v1 = vsub.f32 1.0, %v479_v23  ;;  %v25_v23 = vld [vmem:[%s1515_s0 + $0x58] sm:$0xff] }
 0x426   :  { %894 = vmatmul.msk.f32.gmra.mxu0 %vm31_vm0, %v24_v22 }
 0x427   :  { %v481_v3 = vmul.f32 %v991_v20, %v480_v1 }
 0x429   :  { %v482_v7 = vadd.f32 %v991_v20, %v481_v3 }
 0x42b   :  { %v486_v9 = vsel %vm485_vm1, %v991_v20, %v482_v7 }
 0x42c   :  { %v491_v12 = vsel %vm488_vm2, %v490_v8, %v486_v9 }
 0x42d   :  { %501 = vrot.lane.b32.xlu0 %v993_v11, %s1065_s23  ;;  %497 = vrot.lane.b32.xlu2 %v491_v12, %s1064_s22 }
 0x42e   :  { %895 = vmatmul.msk.f32.gmra.mxu0 %vm31_vm0, %v25_v23 }
 0x435   :  { %505 = vrot.lane.b32.xlu2 %v491_v12, %s1063_s2 }
 0x482   :  { %v500_v15 = vpop.permute.xlu1 %499 }
 0x483   :  { %v509_v17 = vmul.f32 %v500_v15, %v476_v0 }
 0x487   :  { %v498_v25 = vpop.permute.xlu2 %497 }
 0x488   :  { %v508_v27 = vmul.f32 %v498_v25, %v1378_v43 }
 0x48f   :  { %v506_v34 = vpop.permute.xlu2 %505 }
 0x497   :  { %v496_v16 = vpop.permute.xlu0 %495  ;;  %v504_v30 = vpop.permute.xlu1 %503 }
 0x498   :  { %v507_v18 = vmul.f32 %v496_v16, %v1374_v36  ;;  %v121_v36 = vpop.f32.mrf.mxu0 }
 0x49a   :  { %v1402_v24 = vadd.f32 %v509_v17, %v507_v18 }
 0x49c   :  { %994 = vtanh.f32 %v1402_v24 }
 0x49f   :  { %v502_v26 = vpop.permute.xlu0 %501 }
 0x4a0   :  { %v510_v28 = vmul.f32 %v502_v26, %v491_v12  ;;  %v124_v40 = vpop.f32.mrf.mxu0 }
 0x4a2   :  { %v995_v29 = vpop.eup %994  ;;  %v1406_v31 = vadd.f32 %v510_v28, %v508_v27 }
 0x4a3   :  { %v515_v32 = vmul.f32 %v995_v29, %v504_v30 }
 0x4a4   :  { %996 = vtanh.f32 %v1406_v31 }
 0x4a5   :  { %912 = vst [vmem:[%s1516_s3 + $0x30] sm:$0xff] %v515_v32  ;;  %536 = vmatmul.f32.vlgmr.msrb.gmra.mxu2 %v515_v32 }
 0x4aa   :  { %v997_v33 = vpop.eup %996 }
 0x4ab   :  { %v516_v35 = vmul.f32 %v997_v33, %v506_v34 }
 0x4ad   :  { %913 = vst [vmem:[%s1516_s3 + $0x38] sm:$0xff] %v516_v35  ;;  %539 = vmatmul.f32.gmra.mxu2 %v516_v35 }
 0x528   :  { %v537_v37 = vpop.f32.mrf.mxu2 }
 0x529   :  { %v543_v38 = vadd.f32 %v537_v37, %v121_v36 }
 0x52b   :  { %v914_v39 = vmul.f32 -1.442695, %v543_v38  ;;  %998 = vtanh.f32 %v543_v38 }
 0x52d   :  { %1000 = vpow2.f32 %v914_v39 }
 0x530   :  { %v540_v41 = vpop.f32.mrf.mxu2 }
 0x531   :  { %v999_v42 = vpop.eup %998  ;;  %v544_v43 = vadd.f32 %v540_v41, %v124_v40 }
 0x532   :  { %589 = vrot.lane.b32.xlu1 %v999_v42, %s1065_s23 }
 0x533   :  { %v1001_v44 = vpop.eup %1000  ;;  %v915_v45 = vmul.f32 -1.442695, %v544_v43 }
 0x534   :  { %v551_v46 = vadd.f32 1.0, %v1001_v44 }
 0x535   :  { %1002 = vpow2.f32 %v915_v45 }
 0x536   :  { %1004 = vrcp.f32 %v551_v46  ;;  %v564_v52 = vand.u32 2147483648, %v551_v46  ;;  %v562_v54 = vand.u32 2147483647, %v551_v46  ;;  %vm558_vm4 = vweird.f32 %v551_v46 }
 0x538   :  { %v565_v57 = vor.u32 1.1754944e-38, %v564_v52  ;;  %vm563_vm6 = vcmp.eq.f32.partialorder %v562_v54, 8.507059e+37 }
 0x53b   :  { %v1003_v47 = vpop.eup %1002 }
 0x53c   :  { %v1005_v48 = vpop.eup %1004  ;;  %v552_v49 = vadd.f32 1.0, %v1003_v47 }
 0x53d   :  { %v554_v50 = vmul.f32 %v1005_v48, %v551_v46  ;;  %vm559_vm3 = vweird.f32 %v1005_v48 }
 0x53e   :  { %1006 = vrcp.f32 %v552_v49  ;;  %vm560_vm5 = vmor %vm558_vm4, %vm559_vm3  ;;  %v579_v62 = vand.u32 2147483648, %v552_v49  ;;  %v577_v4 = vand.u32 2147483647, %v552_v49  ;;  %vm573_vm8 = vweird.f32 %v552_v49 }
 0x53f   :  { %v555_v51 = vsub.f32 1.0, %v554_v50  ;;  %1008 = vtanh.f32 %v544_v43 }
 0x540   :  { %v580_v10 = vor.u32 1.1754944e-38, %v579_v62  ;;  %vm578_vm10 = vcmp.eq.f32.partialorder %v577_v4, 8.507059e+37 }
 0x541   :  { %v556_v53 = vmul.f32 %v1005_v48, %v555_v51 }
 0x543   :  { %v557_v55 = vadd.f32 %v1005_v48, %v556_v53 }
 0x544   :  { %v1007_v56 = vpop.eup %1006 }
 0x545   :  { %v561_v58 = vsel %vm560_vm5, %v1005_v48, %v557_v55  ;;  %v569_v59 = vmul.f32 %v1007_v56, %v552_v49  ;;  %vm574_vm7 = vweird.f32 %v1007_v56  ;;  %v1009_v20 = vpop.eup %1008 }
 0x546   :  { %v566_v60 = vsel %vm563_vm6, %v565_v57, %v561_v58  ;;  %vm575_vm9 = vmor %vm573_vm8, %vm574_vm7  ;;  %v26_v58 = vld [vmem:[%s1515_s0 + $0x60] sm:$0xff] }
 0x547   :  { %593 = vrot.lane.b32.xlu1 %v566_v60, %s1063_s2  ;;  %585 = vrot.lane.b32.xlu0 %v566_v60, %s1064_s22  ;;  %v570_v61 = vsub.f32 1.0, %v569_v59  ;;  %v27_v59 = vld [vmem:[%s1515_s0 + $0x68] sm:$0xff] }
 0x548   :  { %896 = vmatmul.msk.f32.gmra.mxu0 %vm31_vm0, %v26_v58 }
 0x549   :  { %v571_v63 = vmul.f32 %v1007_v56, %v570_v61 }
 0x54b   :  { %v572_v5 = vadd.f32 %v1007_v56, %v571_v63 }
 0x54d   :  { %v576_v19 = vsel %vm575_vm9, %v1007_v56, %v572_v5 }
 0x54e   :  { %v581_v21 = vsel %vm578_vm10, %v580_v10, %v576_v19 }
 0x54f   :  { %591 = vrot.lane.b32.xlu0 %v1009_v20, %s1065_s23  ;;  %587 = vrot.lane.b32.xlu2 %v581_v21, %s1064_s22 }
 0x550   :  { %897 = vmatmul.msk.f32.gmra.mxu0 %vm31_vm0, %v27_v59 }
 0x557   :  { %595 = vrot.lane.b32.xlu2 %v581_v21, %s1063_s2 }
 0x5a4   :  { %v590_v0 = vpop.permute.xlu1 %589 }
 0x5a5   :  { %v599_v2 = vmul.f32 %v590_v0, %v566_v60 }
 0x5a9   :  { %v588_v7 = vpop.permute.xlu2 %587 }
 0x5aa   :  { %v598_v9 = vmul.f32 %v588_v7, %v1406_v31 }
 0x5b1   :  { %v596_v17 = vpop.permute.xlu2 %595 }
 0x5b9   :  { %v586_v1 = vpop.permute.xlu0 %585  ;;  %v594_v13 = vpop.permute.xlu1 %593 }
 0x5ba   :  { %v597_v3 = vmul.f32 %v586_v1, %v1402_v24  ;;  %v127_v24 = vpop.f32.mrf.mxu0 }
 0x5bc   :  { %v1430_v6 = vadd.f32 %v599_v2, %v597_v3 }
 0x5be   :  { %1010 = vtanh.f32 %v1430_v6 }
 0x5c1   :  { %v592_v8 = vpop.permute.xlu0 %591 }
 0x5c2   :  { %v600_v11 = vmul.f32 %v592_v8, %v581_v21  ;;  %v130_v28 = vpop.f32.mrf.mxu0 }
 0x5c4   :  { %v1011_v12 = vpop.eup %1010  ;;  %v1434_v14 = vadd.f32 %v600_v11, %v598_v9 }
 0x5c5   :  { %v605_v15 = vmul.f32 %v1011_v12, %v594_v13 }
 0x5c6   :  { %1012 = vtanh.f32 %v1434_v14 }
 0x5c7   :  { %916 = vst [vmem:[%s1516_s3 + $0x40] sm:$0xff] %v605_v15  ;;  %626 = vmatmul.f32.vlgmr.msrb.gmra.mxu3 %v605_v15 }
 0x5cc   :  { %v1013_v16 = vpop.eup %1012 }
 0x5cd   :  { %v606_v18 = vmul.f32 %v1013_v16, %v596_v17 }
 0x5cf   :  { %917 = vst [vmem:[%s1516_s3 + $0x48] sm:$0xff] %v606_v18  ;;  %629 = vmatmul.f32.gmra.mxu3 %v606_v18 }
 0x64a   :  { %v627_v25 = vpop.f32.mrf.mxu3 }
 0x64b   :  { %v633_v26 = vadd.f32 %v627_v25, %v127_v24 }
 0x64d   :  { %v918_v27 = vmul.f32 -1.442695, %v633_v26  ;;  %1014 = vtanh.f32 %v633_v26 }
 0x64f   :  { %1016 = vpow2.f32 %v918_v27 }
 0x652   :  { %v630_v29 = vpop.f32.mrf.mxu3 }
 0x653   :  { %v1015_v30 = vpop.eup %1014  ;;  %v634_v31 = vadd.f32 %v630_v29, %v130_v28 }
 0x654   :  { %679 = vrot.lane.b32.xlu1 %v1015_v30, %s1065_s23 }
 0x655   :  { %v1017_v32 = vpop.eup %1016  ;;  %v919_v33 = vmul.f32 -1.442695, %v634_v31 }
 0x656   :  { %v641_v34 = vadd.f32 1.0, %v1017_v32 }
 0x657   :  { %1018 = vpow2.f32 %v919_v33 }
 0x658   :  { %1020 = vrcp.f32 %v641_v34  ;;  %v654_v40 = vand.u32 2147483648, %v641_v34  ;;  %v652_v42 = vand.u32 2147483647, %v641_v34  ;;  %vm648_vm12 = vweird.f32 %v641_v34 }
 0x65a   :  { %v655_v45 = vor.u32 1.1754944e-38, %v654_v40  ;;  %vm653_vm14 = vcmp.eq.f32.partialorder %v652_v42, 8.507059e+37 }
 0x65d   :  { %v1019_v35 = vpop.eup %1018 }
 0x65e   :  { %v1021_v36 = vpop.eup %1020  ;;  %v642_v37 = vadd.f32 1.0, %v1019_v35 }
 0x65f   :  { %v644_v38 = vmul.f32 %v1021_v36, %v641_v34  ;;  %vm649_vm11 = vweird.f32 %v1021_v36 }
 0x660   :  { %1022 = vrcp.f32 %v642_v37  ;;  %vm650_vm13 = vmor %vm648_vm12, %vm649_vm11  ;;  %v669_v50 = vand.u32 2147483648, %v642_v37  ;;  %v667_v52 = vand.u32 2147483647, %v642_v37  ;;  %vm663_vm1 = vweird.f32 %v642_v37 }
 0x661   :  { %v645_v39 = vsub.f32 1.0, %v644_v38  ;;  %1024 = vtanh.f32 %v634_v31 }
 0x662   :  { %v670_v54 = vor.u32 1.1754944e-38, %v669_v50  ;;  %vm668_vm3 = vcmp.eq.f32.partialorder %v667_v52, 8.507059e+37 }
 0x663   :  { %v646_v41 = vmul.f32 %v1021_v36, %v645_v39 }
 0x665   :  { %v647_v43 = vadd.f32 %v1021_v36, %v646_v41 }
 0x666   :  { %v1023_v44 = vpop.eup %1022 }
 0x667   :  { %v651_v46 = vsel %vm650_vm13, %v1021_v36, %v647_v43  ;;  %v659_v47 = vmul.f32 %v1023_v44, %v642_v37  ;;  %vm664_vm15 = vweird.f32 %v1023_v44  ;;  %v1025_v56 = vpop.eup %1024 }
 0x668   :  { %v656_v48 = vsel %vm653_vm14, %v655_v45, %v651_v46  ;;  %vm665_vm2 = vmor %vm663_vm1, %vm664_vm15  ;;  %v28_v46 = vld [vmem:[%s1515_s0 + $0x70] sm:$0xff] }
 0x669   :  { %683 = vrot.lane.b32.xlu1 %v656_v48, %s1063_s2  ;;  %675 = vrot.lane.b32.xlu0 %v656_v48, %s1064_s22  ;;  %v660_v49 = vsub.f32 1.0, %v659_v47  ;;  %v29_v47 = vld [vmem:[%s1515_s0 + $0x78] sm:$0xff] }
 0x66a   :  { %898 = vmatmul.msk.f32.gmra.mxu0 %vm31_vm0, %v28_v46 }
 0x66b   :  { %v661_v51 = vmul.f32 %v1023_v44, %v660_v49 }
 0x66d   :  { %v662_v53 = vadd.f32 %v1023_v44, %v661_v51 }
 0x66f   :  { %v666_v55 = vsel %vm665_vm2, %v1023_v44, %v662_v53 }
 0x670   :  { %v671_v57 = vsel %vm668_vm3, %v670_v54, %v666_v55 }
 0x671   :  { %681 = vrot.lane.b32.xlu0 %v1025_v56, %s1065_s23  ;;  %677 = vrot.lane.b32.xlu2 %v671_v57, %s1064_s22 }
 0x672   :  { %899 = vmatmul.msk.f32.gmra.mxu0 %vm31_vm0, %v29_v47 }
 0x679   :  { %685 = vrot.lane.b32.xlu2 %v671_v57, %s1063_s2 }
 0x6c6   :  { %v680_v60 = vpop.permute.xlu1 %679 }
 0x6c7   :  { %v689_v62 = vmul.f32 %v680_v60, %v656_v48 }
 0x6cb   :  { %v678_v5 = vpop.permute.xlu2 %677 }
 0x6cc   :  { %v688_v19 = vmul.f32 %v678_v5, %v1434_v14 }
 0x6d3   :  { %v686_v2 = vpop.permute.xlu2 %685 }
 0x6db   :  { %v676_v61 = vpop.permute.xlu0 %675  ;;  %v684_v22 = vpop.permute.xlu1 %683 }
 0x6dc   :  { %v687_v63 = vmul.f32 %v676_v61, %v1430_v6  ;;  %v133_v6 = vpop.f32.mrf.mxu0 }
 0x6de   :  { %v1458_v4 = vadd.f32 %v689_v62, %v687_v63 }
 0x6e0   :  { %1026 = vtanh.f32 %v1458_v4 }
 0x6e3   :  { %v682_v10 = vpop.permute.xlu0 %681 }
 0x6e4   :  { %v690_v20 = vmul.f32 %v682_v10, %v671_v57  ;;  %v136_v11 = vpop.f32.mrf.mxu0 }
 0x6e6   :  { %v1027_v21 = vpop.eup %1026  ;;  %v1462_v23 = vadd.f32 %v690_v20, %v688_v19 }
 0x6e7   :  { %v695_v0 = vmul.f32 %v1027_v21, %v684_v22 }
 0x6e8   :  { %1028 = vtanh.f32 %v1462_v23 }
 0x6e9   :  { %920 = vst [vmem:[%s1516_s3 + $0x50] sm:$0xff] %v695_v0  ;;  %716 = vmatmul.f32.vlgmr.msra.gmra.mxu1 %v695_v0 }
 0x6ee   :  { %v1029_v1 = vpop.eup %1028 }
 0x6ef   :  { %v696_v3 = vmul.f32 %v1029_v1, %v686_v2 }
 0x6f1   :  { %921 = vst [vmem:[%s1516_s3 + $0x58] sm:$0xff] %v696_v3  ;;  %719 = vmatmul.f32.gmra.mxu1 %v696_v3 }
 0x766   :  { %v717_v7 = vpop.f32.mrf.mxu1 }
 0x767   :  { %v723_v8 = vadd.f32 %v717_v7, %v133_v6 }
 0x769   :  { %v922_v9 = vmul.f32 -1.442695, %v723_v8  ;;  %1030 = vtanh.f32 %v723_v8 }
 0x76b   :  { %1032 = vpow2.f32 %v922_v9 }
 0x76e   :  { %v720_v12 = vpop.f32.mrf.mxu1 }
 0x76f   :  { %v1031_v13 = vpop.eup %1030  ;;  %v724_v14 = vadd.f32 %v720_v12, %v136_v11 }
 0x770   :  { %769 = vrot.lane.b32.xlu1 %v1031_v13, %s1065_s23 }
 0x771   :  { %v1033_v15 = vpop.eup %1032  ;;  %v923_v16 = vmul.f32 -1.442695, %v724_v14 }
 0x772   :  { %v731_v17 = vadd.f32 1.0, %v1033_v15 }
 0x773   :  { %1034 = vpow2.f32 %v923_v16 }
 0x774   :  { %1036 = vrcp.f32 %v731_v17  ;;  %v744_v28 = vand.u32 2147483648, %v731_v17  ;;  %v742_v30 = vand.u32 2147483647, %v731_v17  ;;  %vm738_vm5 = vweird.f32 %v731_v17 }
 0x776   :  { %v745_v33 = vor.u32 1.1754944e-38, %v744_v28  ;;  %vm743_vm7 = vcmp.eq.f32.partialorder %v742_v30, 8.507059e+37 }
 0x779   :  { %v1035_v18 = vpop.eup %1034 }
 0x77a   :  { %v1037_v24 = vpop.eup %1036  ;;  %v732_v25 = vadd.f32 1.0, %v1035_v18 }
 0x77b   :  { %v734_v26 = vmul.f32 %v1037_v24, %v731_v17  ;;  %vm739_vm4 = vweird.f32 %v1037_v24 }
 0x77c   :  { %1038 = vrcp.f32 %v732_v25  ;;  %vm740_vm6 = vmor %vm738_vm5, %vm739_vm4  ;;  %v759_v38 = vand.u32 2147483648, %v732_v25  ;;  %v757_v40 = vand.u32 2147483647, %v732_v25  ;;  %vm753_vm9 = vweird.f32 %v732_v25 }
 0x77d   :  { %v735_v27 = vsub.f32 1.0, %v734_v26  ;;  %1040 = vtanh.f32 %v724_v14 }
 0x77e   :  { %v760_v42 = vor.u32 1.1754944e-38, %v759_v38  ;;  %vm758_vm11 = vcmp.eq.f32.partialorder %v757_v40, 8.507059e+37 }
 0x77f   :  { %v736_v29 = vmul.f32 %v1037_v24, %v735_v27 }
 0x781   :  { %v737_v31 = vadd.f32 %v1037_v24, %v736_v29 }
 0x782   :  { %v1039_v32 = vpop.eup %1038 }
 0x783   :  { %v741_v34 = vsel %vm740_vm6, %v1037_v24, %v737_v31  ;;  %v749_v35 = vmul.f32 %v1039_v32, %v732_v25  ;;  %vm754_vm8 = vweird.f32 %v1039_v32  ;;  %v1041_v44 = vpop.eup %1040 }
 0x784   :  { %v746_v36 = vsel %vm743_vm7, %v745_v33, %v741_v34  ;;  %vm755_vm10 = vmor %vm753_vm9, %vm754_vm8 }
 0x785   :  { %773 = vrot.lane.b32.xlu1 %v746_v36, %s1063_s2  ;;  %765 = vrot.lane.b32.xlu0 %v746_v36, %s1064_s22  ;;  %v750_v37 = vsub.f32 1.0, %v749_v35 }
 0x787   :  { %v751_v39 = vmul.f32 %v1039_v32, %v750_v37 }
 0x789   :  { %v752_v41 = vadd.f32 %v1039_v32, %v751_v39 }
 0x78b   :  { %v756_v43 = vsel %vm755_vm10, %v1039_v32, %v752_v41 }
 0x78c   :  { %v761_v45 = vsel %vm758_vm11, %v760_v42, %v756_v43 }
 0x78d   :  { %771 = vrot.lane.b32.xlu0 %v1041_v44, %s1065_s23  ;;  %767 = vrot.lane.b32.xlu2 %v761_v45, %s1064_s22 }
 0x795   :  { %775 = vrot.lane.b32.xlu2 %v761_v45, %s1063_s2 }
 0x7e2   :  { %v770_v48 = vpop.permute.xlu1 %769 }
 0x7e3   :  { %v779_v50 = vmul.f32 %v770_v48, %v746_v36 }
 0x7e7   :  { %v768_v53 = vpop.permute.xlu2 %767 }
 0x7e8   :  { %v778_v55 = vmul.f32 %v768_v53, %v1462_v23 }
 0x7ef   :  { %v776_v62 = vpop.permute.xlu2 %775 }
 0x7f7   :  { %v766_v49 = vpop.permute.xlu0 %765  ;;  %v774_v58 = vpop.permute.xlu1 %773 }
 0x7f8   :  { %v777_v51 = vmul.f32 %v766_v49, %v1458_v4  ;;  %v139_v4 = vpop.f32.mrf.mxu0 }
 0x7fa   :  { %v1486_v52 = vadd.f32 %v779_v50, %v777_v51 }
 0x7fc   :  { %1042 = vtanh.f32 %v1486_v52 }
 0x7ff   :  { %v772_v54 = vpop.permute.xlu0 %771 }
 0x800   :  { %v780_v56 = vmul.f32 %v772_v54, %v761_v45  ;;  %v142_v20 = vpop.f32.mrf.mxu0 }
 0x802   :  { %v1043_v57 = vpop.eup %1042  ;;  %v1490_v59 = vadd.f32 %v780_v56, %v778_v55 }
 0x803   :  { %v785_v60 = vmul.f32 %v1043_v57, %v774_v58 }
 0x804   :  { %1044 = vtanh.f32 %v1490_v59 }
 0x805   :  { %924 = vst [vmem:[%s1516_s3 + $0x60] sm:$0xff] %v785_v60  ;;  %806 = vmatmul.f32.vlgmr.msra.gmra.mxu2 %v785_v60 }
 0x80a   :  { %v1045_v61 = vpop.eup %1044 }
 0x80b   :  { %v786_v63 = vmul.f32 %v1045_v61, %v776_v62 }
 0x80d   :  { %925 = vst [vmem:[%s1516_s3 + $0x68] sm:$0xff] %v786_v63  ;;  %809 = vmatmul.f32.gmra.mxu2 %v786_v63 }
 0x888   :  { %v807_v5 = vpop.f32.mrf.mxu2 }
 0x889   :  { %v813_v10 = vadd.f32 %v807_v5, %v139_v4 }
 0x88b   :  { %v926_v19 = vmul.f32 -1.442695, %v813_v10  ;;  %1046 = vtanh.f32 %v813_v10 }
 0x88d   :  { %1048 = vpow2.f32 %v926_v19 }
 0x890   :  { %v810_v21 = vpop.f32.mrf.mxu2 }
 0x891   :  { %v1047_v22 = vpop.eup %1046  ;;  %v814_v23 = vadd.f32 %v810_v21, %v142_v20 }
 0x892   :  { %859 = vrot.lane.b32.xlu2 %v1047_v22, %s1065_s23 }
 0x893   :  { %v1049_v0 = vpop.eup %1048  ;;  %v927_v1 = vmul.f32 -1.442695, %v814_v23 }
 0x894   :  { %v821_v2 = vadd.f32 1.0, %v1049_v0 }
 0x895   :  { %1050 = vpow2.f32 %v927_v1 }
 0x896   :  { %1052 = vrcp.f32 %v821_v2  ;;  %v834_v11 = vand.u32 2147483648, %v821_v2  ;;  %v832_v13 = vand.u32 2147483647, %v821_v2  ;;  %vm828_vm12 = vweird.f32 %v821_v2 }
 0x898   :  { %v835_v16 = vor.u32 1.1754944e-38, %v834_v11  ;;  %vm833_vm14 = vcmp.eq.f32.partialorder %v832_v13, 8.507059e+37 }
 0x89b   :  { %v1051_v3 = vpop.eup %1050 }
 0x89c   :  { %v1053_v6 = vpop.eup %1052  ;;  %v822_v7 = vadd.f32 1.0, %v1051_v3 }
 0x89d   :  { %v824_v8 = vmul.f32 %v1053_v6, %v821_v2  ;;  %vm829_vm0 = vweird.f32 %v1053_v6 }
 0x89e   :  { %1054 = vrcp.f32 %v822_v7  ;;  %vm830_vm13 = vmor %vm828_vm12, %vm829_vm0  ;;  %v849_v26 = vand.u32 2147483648, %v822_v7  ;;  %v847_v28 = vand.u32 2147483647, %v822_v7  ;;  %vm843_vm1 = vweird.f32 %v822_v7 }
 0x89f   :  { %v825_v9 = vsub.f32 1.0, %v824_v8  ;;  %1056 = vtanh.f32 %v814_v23 }
 0x8a0   :  { %v850_v30 = vor.u32 1.1754944e-38, %v849_v26  ;;  %vm848_vm3 = vcmp.eq.f32.partialorder %v847_v28, 8.507059e+37 }
 0x8a1   :  { %v826_v12 = vmul.f32 %v1053_v6, %v825_v9 }
 0x8a3   :  { %v827_v14 = vadd.f32 %v1053_v6, %v826_v12 }
 0x8a4   :  { %v1055_v15 = vpop.eup %1054 }
 0x8a5   :  { %v831_v17 = vsel %vm830_vm13, %v1053_v6, %v827_v14  ;;  %v839_v18 = vmul.f32 %v1055_v15, %v822_v7  ;;  %vm844_vm15 = vweird.f32 %v1055_v15  ;;  %v1057_v32 = vpop.eup %1056 }
 0x8a6   :  { %v836_v24 = vsel %vm833_vm14, %v835_v16, %v831_v17  ;;  %vm845_vm2 = vmor %vm843_vm1, %vm844_vm15 }
 0x8a7   :  { %855 = vrot.lane.b32.xlu0 %v836_v24, %s1064_s22  ;;  %v840_v25 = vsub.f32 1.0, %v839_v18 }
 0x8a9   :  { %v841_v27 = vmul.f32 %v1055_v15, %v840_v25 }
 0x8ab   :  { %v842_v29 = vadd.f32 %v1055_v15, %v841_v27 }
 0x8ad   :  { %v846_v31 = vsel %vm845_vm2, %v1055_v15, %v842_v29 }
 0x8ae   :  { %v851_v33 = vsel %vm848_vm3, %v850_v30, %v846_v31 }
 0x8af   :  { %861 = vrot.lane.b32.xlu0 %v1057_v32, %s1065_s23  ;;  %865 = vrot.lane.b32.xlu2 %v851_v33, %s1063_s2 }
 0x8b0   :  { %857 = vrot.lane.b32.xlu1 %v851_v33, %s1064_s22 }
 0x8b8   :  { %863 = vrot.lane.b32.xlu1 %v836_v24, %s1063_s2 }
 0x8ec   :  { %v860_v35 = vpop.permute.xlu2 %859 }
 0x8ed   :  { %v869_v37 = vmul.f32 %v860_v35, %v836_v24 }
 0x909   :  { %v866_v48 = vpop.permute.xlu2 %865 }
 0x919   :  { %v856_v34 = vpop.permute.xlu0 %855 }
 0x91a   :  { %v867_v36 = vmul.f32 %v856_v34, %v1486_v52 }
 0x91c   :  { %v871_v38 = vadd.f32 %v869_v37, %v867_v36 }
 0x91e   :  { %1058 = vtanh.f32 %v871_v38 }
 0x921   :  { %v862_v39 = vpop.permute.xlu0 %861 }
 0x922   :  { %v870_v40 = vmul.f32 %v862_v39, %v851_v33  ;;  %v858_v41 = vpop.permute.xlu1 %857 }
 0x923   :  { %v868_v42 = vmul.f32 %v858_v41, %v1490_v59 }
 0x924   :  { %v1059_v44 = vpop.eup %1058 }
 0x925   :  { %v872_v43 = vadd.f32 %v870_v40, %v868_v42 }
 0x927   :  { %1060 = vtanh.f32 %v872_v43 }
 0x92a   :  { %v864_v45 = vpop.permute.xlu1 %863 }
 0x92b   :  { %v875_v46 = vmul.f32 %v1059_v44, %v864_v45 }
 0x92d   :  { %v1061_v47 = vpop.eup %1060  ;;  %928 = vst [vmem:[%s1516_s3 + $0x70] sm:$0xff] %v875_v46 }
 0x92e   :  { %v876_v49 = vmul.f32 %v1061_v47, %v866_v48 }
 0x930   :  { %929 = vst [vmem:[%s1516_s3 + $0x78] sm:$0xff] %v876_v49 }

</bundles_post_ra>
